<compile_context>
chip_gen: v7x
topology: tpu7x:2x2x1
jax: 0.10.0
libtpu: 0.0.40
codegen_flags: <defaults>
</compile_context>

<pallas_src>
import functools

import jax
import jax.numpy as jnp
from jax import lax
from jax.experimental import pallas as pl
from jax.experimental.pallas import tpu as pltpu


_VMEM_SPEC = pl.BlockSpec(memory_space=pltpu.MemorySpace.VMEM)
_NEG_BIG = -1e9  # finite "minus infinity" for padded vocab columns


# ----------------------------------------------------------------------------
# Pallas kernels
# ----------------------------------------------------------------------------

def _seq_pred_fused_kernel(ids_in_ref, ids_tg_ref, z_ref, w_init_ref, b_init_ref,
                           w_in_ref, b_in_ref, w_hh_ref, b_hh_ref,
                           w_out_ref, b_out_ref, loss_ref, gi_scr, hs_scr,
                           *, n_pred: int, pad_id: int):
    """P teacher-forced GRU sequence predictors fused into one body.

    Weights are block-diagonal / gate-interleaved so one dot per step drives all
    P recurrences. ids_* are int32 [steps, Bp] (Bp padded to a multiple of 16).
    Gate layout of gi/gh columns: [r(0..P*H) | u(..) | n(..)].
    Returns summed masked token NLL per predictor in loss rows 0..P-1.
    """
    steps, bp = ids_in_ref.shape
    ph = w_hh_ref.shape[0]            # P * H
    vp = w_in_ref.shape[0]            # padded vocab
    n = steps * bp

    # latent -> initial hidden state (block-diag init weight handles all P)
    h0 = jnp.tanh(jnp.dot(z_ref[...].astype(jnp.bfloat16), w_init_ref[...],
                          preferred_element_type=jnp.float32) + b_init_ref[...])

    # ---- input path hoisted out of the recurrence: one-hot @ (emb @ W_ih) ----
    ids_in = ids_in_ref[...]                                            # [steps, Bp] i32
    col3 = lax.broadcasted_iota(jnp.int32, (steps, bp, vp), 2)
    oh_in = jnp.where(ids_in[:, :, None] == col3, 1.0, 0.0).astype(jnp.bfloat16)
    oh_in = oh_in.reshape(n, vp)                                        # [N, Vp] bf16
    gi_scr[...] = (jnp.dot(oh_in, w_in_ref[...],
                           preferred_element_type=jnp.float32) + b_in_ref[...])

    # ---- serial recurrence: only h_cat @ W_hh_blk remains inside the loop ----
    w_hh = w_hh_ref[...]                                                # [PH, 3PH] bf16
    b_hh_full = jnp.broadcast_to(b_hh_ref[...], (bp, 3 * ph))           # hoisted

    def step(t, h):
        row = pl.multiple_of(t * bp, bp)
        gi_t = gi_scr[pl.ds(row, bp), :]                                # [Bp, 3PH]
        gh = jnp.dot(h.astype(jnp.bfloat16), w_hh,
                     preferred_element_type=jnp.float32) + b_hh_full    # [Bp, 3PH]
        r = jax.nn.sigmoid(gi_t[:, 0:ph] + gh[:, 0:ph])
        u = jax.nn.sigmoid(gi_t[:, ph:2 * ph] + gh[:, ph:2 * ph])
        c = jnp.tanh(gi_t[:, 2 * ph:3 * ph] + r * gh[:, 2 * ph:3 * ph])
        h_new = (1.0 - u) * c + u * h
        hs_scr[pl.ds(row, bp), :] = h_new.astype(jnp.bfloat16)          # bf16 scratch
        return h_new

    lax.fori_loop(0, steps, step, h0, unroll=(True if steps <= 16 else 8))

    # ---- epilogue: one block-diag output GEMM + per-predictor masked NLL -----
    hs = hs_scr[...]                                                    # [N, PH] bf16
    logits_all = (jnp.dot(hs, w_out_ref[...],
                          preferred_element_type=jnp.float32) + b_out_ref[...])

    ids_tg = ids_tg_ref[...][:, :, None]                                # [steps, Bp, 1]
    col3t = lax.broadcasted_iota(jnp.int32, (steps, bp, vp), 2)
    oh_tgm = jnp.where((ids_tg == col3t) & (ids_tg != pad_id), 1.0, 0.0)
    oh_tgm = oh_tgm.reshape(n, vp)                                      # [N, Vp] f32

    out = jnp.zeros((8, 128), jnp.float32)
    row_iota = lax.broadcasted_iota(jnp.int32, (8, 128), 0)
    for p in range(n_pred):                                             # P is static
        lp = logits_all[:, p * vp:(p + 1) * vp]                         # lane-aligned
        m = jnp.max(lp, axis=-1, keepdims=True)
        lse = m + jnp.log(jnp.sum(jnp.exp(lp - m), axis=-1, keepdims=True))
        total = jnp.sum(oh_tgm * (lse - lp))                            # masked NLL sum
        out = out + jnp.where(row_iota == p, total, 0.0)
    loss_ref[...] = out


def _bow_pred_kernel(z_ref, counts_ref, w1_ref, b1_ref, w2_ref, b2_ref,
                     w_out_ref, b_out_ref, loss_ref):
    """BoW predictor: latent -> MLP -> vocab logits; summed masked BoW NLL."""
    z = z_ref[...]                                                      # [Bp, Din]
    h = jnp.tanh(jnp.dot(z.astype(jnp.bfloat16), w1_ref[...],
                         preferred_element_type=jnp.float32) + b1_ref[...])
    e = jnp.tanh(jnp.dot(h.astype(jnp.bfloat16), w2_ref[...],
                         preferred_element_type=jnp.float32) + b2_ref[...])
    logits = jnp.dot(e.astype(jnp.bfloat16), w_out_ref[...],
                     preferred_element_type=jnp.float32) + b_out_ref[...]
    m = jnp.max(logits, axis=-1, keepdims=True)
    lse = m + jnp.log(jnp.sum(jnp.exp(logits - m), axis=-1, keepdims=True))
    total = jnp.sum(counts_ref[...] * (lse - logits))
    loss_ref[...] = jnp.broadcast_to(total, (8, 128))


# ----------------------------------------------------------------------------
# Wrapper helpers (plain XLA glue, traced once per call)
# ----------------------------------------------------------------------------

def _round_up(x, m):
    return ((x + m - 1) // m) * m


def _pad_tokens(tokens, pad_id, bp):
    t, b = tokens.shape
    if b == bp:
        return tokens
    return jnp.concatenate(
        [tokens, jnp.full((t, bp - b), pad_id, tokens.dtype)], axis=1)


def _pad_rows(x, rows, fill=0.0):
    r, c = x.shape
    if r == rows:
        return x
    return jnp.concatenate([x, jnp.full((rows - r, c), fill, x.dtype)], axis=0)


def _pad_cols(x, cols, fill=0.0):
    r, c = x.shape
    if c == cols:
        return x
    return jnp.concatenate([x, jnp.full((r, cols - c), fill, x.dtype)], axis=1)


def _gate_interleave(mats, h):
    """mats: list (per predictor) of [R, 3h]; -> [R, 3*P*h] with column layout
    [r_p0|r_p1|...|u_p0|u_p1|...|n_p0|n_p1|...]."""
    parts = []
    for g in range(3):
        for m in mats:
            parts.append(m[:, g * h:(g + 1) * h])
    return jnp.concatenate(parts, axis=1)


def sequence_predictor_loss_multi(tokens, z_list, params_list, pad_id):
    """tokens: int32 [T, B]; z_list[p]: f32 [B, Din_p]; params_list[p]: dict.
    All predictors must share hidden_dim and vocab. Returns list of P scalar
    summed-NLL losses computed by a single fused Pallas kernel."""
    P = len(z_list)
    assert 1 <= P <= 8
    T, B = tokens.shape
    Bp = max(16, _round_up(B, 16))          # bf16 sublane-aligned batch
    H = params_list[0]["w_hh"].shape[0]
    V = params_list[0]["emb"].shape[0]
    Vp = _round_up(V, 128)                  # lane-dense vocab
    PH = P * H
    steps = T - 1
    N = steps * Bp

    toks = _pad_tokens(tokens.astype(jnp.int32), int(pad_id), Bp)       # [T, Bp]
    ids_in = toks[:-1]                                                  # [steps, Bp]
    ids_tg = toks[1:]

    # ---- build fused / block-diagonal parameters (tiny, plain XLA) ----------
    z_cat = jnp.concatenate(
        [_pad_rows(z.astype(jnp.float32), Bp) for z in z_list], axis=1)  # [Bp, sumDin]
    dims = [z.shape[1] for z in z_list]
    d_off = [0]
    for d in dims:
        d_off.append(d_off[-1] + d)

    w_init_blk = jnp.zeros((d_off[-1], PH), jnp.float32)
    for p, par in enumerate(params_list):
        w_init_blk = w_init_blk.at[d_off[p]:d_off[p + 1],
                                   p * H:(p + 1) * H].set(par["w_init"].astype(jnp.float32))
    b_init_cat = jnp.concatenate([par["b_init"] for par in params_list], axis=1)

    # fused input weight: emb @ W_ih per predictor, gate-interleaved, V padded
    wf = [jnp.dot(par["emb"].astype(jnp.float32), par["w_ih"].astype(jnp.float32))
          for par in params_list]                                        # [V, 3H] each
    w_in_fused = _pad_rows(_gate_interleave(wf, H), Vp)                  # [Vp, 3PH]
    b_in_cat = _gate_interleave([par["b_ih"] for par in params_list], H)  # [1, 3PH]

    w_hh_blk = jnp.zeros((PH, 3 * PH), jnp.float32)
    for p, par in enumerate(params_list):
        whh = par["w_hh"].astype(jnp.float32)
        for g in range(3):
            w_hh_blk = w_hh_blk.at[p * H:(p + 1) * H,
                                   g * PH + p * H:g * PH + (p + 1) * H].set(
                                       whh[:, g * H:(g + 1) * H])
    b_hh_cat = _gate_interleave([par["b_hh"] for par in params_list], H)  # [1, 3PH]

    w_out_blk = jnp.zeros((PH, P * Vp), jnp.float32)
    b_out_cat = jnp.full((1, P * Vp), _NEG_BIG, jnp.float32)
    for p, par in enumerate(params_list):
        w_out_blk = w_out_blk.at[p * H:(p + 1) * H,
                                 p * Vp:p * Vp + V].set(par["w_out"].astype(jnp.float32))
        b_out_cat = b_out_cat.at[:, p * Vp:p * Vp + V].set(par["b_out"])

    args = (ids_in, ids_tg, z_cat,
            w_init_blk.astype(jnp.bfloat16), b_init_cat,
            w_in_fused.astype(jnp.bfloat16), b_in_cat,
            w_hh_blk.astype(jnp.bfloat16), b_hh_cat,
            w_out_blk.astype(jnp.bfloat16), b_out_cat)

    flops = int(2 * (Bp * d_off[-1] * PH + N * Vp * 3 * PH
                     + steps * Bp * PH * 3 * PH + N * PH * P * Vp))
    transc = int(N * 3 * PH + N * P * Vp + Bp * PH)
    bytes_acc = int(sum(int(a.size) * a.dtype.itemsize for a in args) + 8 * 128 * 4)

    out = pl.pallas_call(
        functools.partial(_seq_pred_fused_kernel, n_pred=P, pad_id=int(pad_id)),
        out_shape=jax.ShapeDtypeStruct((8, 128), jnp.float32),
        in_specs=[_VMEM_SPEC] * 11,
        out_specs=_VMEM_SPEC,
        scratch_shapes=[pltpu.VMEM((N, 3 * PH), jnp.float32),   # input-gate pre-acts
                        pltpu.VMEM((N, PH), jnp.bfloat16)],     # hidden states (bf16)
        compiler_params=pltpu.CompilerParams(vmem_limit_bytes=48 * 1024 * 1024),
        cost_estimate=pl.CostEstimate(flops=flops, transcendentals=transc,
                                      bytes_accessed=bytes_acc),
    )(*args)
    return [out[p, 0] for p in range(P)]


def _bow_counts(targets, vocab_p, pad_id):
    """counts[b, v] = #non-pad occurrences of token v (scatter-free one-hot sum)."""
    col = jnp.arange(vocab_p, dtype=jnp.int32)[None, None, :]
    hit = (targets[:, :, None] == col) & (targets[:, :, None] != pad_id)
    return jnp.sum(hit.astype(jnp.float32), axis=0)                      # [B, Vp]


def bow_predictor_loss(z, targets, params, pad_id):
    """z: f32 [B, Din]; targets: int32 [T-1, B]. Returns scalar summed BoW NLL."""
    B, Din = z.shape
    Hb = params["w1"].shape[1]
    E = params["w2"].shape[1]
    V = params["w_out"].shape[1]
    Vp = _round_up(V, 128)
    Bp = max(16, _round_up(B, 16))

    counts = _bow_counts(targets.astype(jnp.int32), Vp, int(pad_id))     # [B, Vp]
    counts = _pad_rows(counts, Bp)
    z_p = _pad_rows(z.astype(jnp.float32), Bp)
    w_out_p = _pad_cols(params["w_out"].astype(jnp.float32), Vp).astype(jnp.bfloat16)
    b_out_p = _pad_cols(params["b_out"], Vp, fill=_NEG_BIG)

    args = (z_p, counts, params["w1"], params["b1"], params["w2"], params["b2"],
            w_out_p, b_out_p)
    flops = int(2 * Bp * (Din * Hb + Hb * E + E * Vp))
    bytes_acc = int(sum(int(a.size) * a.dtype.itemsize for a in args) + 8 * 128 * 4)

    out = pl.pallas_call(
        _bow_pred_kernel,
        out_shape=jax.ShapeDtypeStruct((8, 128), jnp.float32),
        in_specs=[_VMEM_SPEC] * 8,
        out_specs=_VMEM_SPEC,
        compiler_params=pltpu.CompilerParams(vmem_limit_bytes=48 * 1024 * 1024),
        cost_estimate=pl.CostEstimate(flops=flops, transcendentals=int(Bp * (Hb + E + Vp)),
                                      bytes_accessed=bytes_acc),
    )(*args)
    return out[0, 0]


# ----------------------------------------------------------------------------
# Parameter initialization (matmul weights bf16 master, biases f32)
# ----------------------------------------------------------------------------

def _dense_init(key, shape, scale=0.1):
    return (scale * jax.random.normal(key, shape, jnp.float32)).astype(jnp.bfloat16)


def init_seq_predictor(key, input_dim, embed_dim, hidden_dim, num_tokens):
    ks = jax.random.split(key, 5)
    return dict(
        emb=_dense_init(ks[0], (num_tokens, embed_dim)),
        w_init=_dense_init(ks[1], (input_dim, hidden_dim)),
        b_init=jnp.zeros((1, hidden_dim), jnp.float32),
        w_ih=_dense_init(ks[2], (embed_dim, 3 * hidden_dim)),
        w_hh=_dense_init(ks[3], (hidden_dim, 3 * hidden_dim)),
        b_ih=jnp.zeros((1, 3 * hidden_dim), jnp.float32),
        b_hh=jnp.zeros((1, 3 * hidden_dim), jnp.float32),
        w_out=_dense_init(ks[4], (hidden_dim, num_tokens)),
        b_out=jnp.zeros((1, num_tokens), jnp.float32),
    )


def init_bow_predictor(key, input_dim, hidden_dim, embed_dim, num_tokens):
    ks = jax.random.split(key, 3)
    return dict(
        w1=_dense_init(ks[0], (input_dim, hidden_dim)),
        b1=jnp.zeros((1, hidden_dim), jnp.float32),
        w2=_dense_init(ks[1], (hidden_dim, embed_dim)),
        b2=jnp.zeros((1, embed_dim), jnp.float32),
        w_out=_dense_init(ks[2], (embed_dim, num_tokens)),
        b_out=jnp.zeros((1, num_tokens), jnp.float32),
    )


def _can_stack(p_a, p_b):
    """Fusable iff hidden size and vocab match (latent dims may differ)."""
    return (p_a["w_hh"].shape == p_b["w_hh"].shape
            and p_a["emb"].shape[0] == p_b["emb"].shape[0]
            and p_a["w_out"].shape[1] == p_b["w_out"].shape[1])


# ----------------------------------------------------------------------------
# SyntaxVAEAdversary (forward semantics of the reference module)
# ----------------------------------------------------------------------------

class SyntaxVAEAdversaryPallas:
    def __init__(self, key, *, sem_latent_dim, syn_latent_dim, embed_dim, hidden_dim,
                 syn_embed_dim, syn_hidden_dim, num_tokens, syn_num_tokens,
                 pad_id=0, syn_pad_id=0,
                 adv_sem=0.5, adv_syn=0.5, rec_sem=1.0, rec_syn=1.0):
        self.adv_sem_weight = adv_sem
        self.adv_syn_weight = adv_syn
        self.rec_sem_weight = rec_sem
        self.rec_syn_weight = rec_syn
        self.pad_id = pad_id
        self.syn_pad_id = syn_pad_id

        ks = jax.random.split(key, 4)
        self.params = {}
        if self.adv_sem_weight > 0:
            self.params["adv_sem"] = init_seq_predictor(
                ks[0], sem_latent_dim, syn_embed_dim, syn_hidden_dim, syn_num_tokens)
        if self.adv_syn_weight > 0:
            self.params["adv_syn"] = init_bow_predictor(
                ks[1], syn_latent_dim, hidden_dim, embed_dim, num_tokens)
        if self.rec_sem_weight > 0:
            self.params["rec_sem"] = init_seq_predictor(
                ks[2], sem_latent_dim, embed_dim, hidden_dim, num_tokens)
        if self.rec_syn_weight > 0:
            self.params["rec_syn"] = init_seq_predictor(
                ks[3], syn_latent_dim, embed_dim, hidden_dim, num_tokens)

    @property
    def weights(self):
        return (self.adv_sem_weight, self.adv_syn_weight,
                self.rec_sem_weight, self.rec_syn_weight)

    def __call__(self, sem_z, syn_z, inputs, syn_inputs, weights=None, adv=True):
        batch_size = inputs.shape[1]
        if weights is None:
            weights = self.weights
        semz = sem_z["z"]
        synz = syn_z["z"]
        if not adv:
            # mirrors .detach() in the reference forward
            semz = lax.stop_gradient(semz)
            synz = lax.stop_gradient(synz)

        adv_sem = adv_syn = rec_sem = rec_syn = 0.0

        if weights[0] > 0:
            (loss,) = sequence_predictor_loss_multi(
                syn_inputs, [semz], [self.params["adv_sem"]], self.syn_pad_id)
            adv_sem = loss * weights[0]

        if weights[1] > 0:
            adv_syn = bow_predictor_loss(
                synz, inputs[1:, :], self.params["adv_syn"], self.pad_id) * weights[1]

        # rec_sem / rec_syn share `inputs`; fuse them into ONE kernel body
        # (interleaved recurrences via block-diag weights) whenever shapes allow.
        rec_jobs = []
        if weights[2] > 0:
            rec_jobs.append(("rec_sem", semz, self.params["rec_sem"], weights[2]))
        if weights[3] > 0:
            rec_jobs.append(("rec_syn", synz, self.params["rec_syn"], weights[3]))

        if rec_jobs:
            if len(rec_jobs) == 2 and _can_stack(rec_jobs[0][2], rec_jobs[1][2]):
                losses = sequence_predictor_loss_multi(
                    inputs, [rec_jobs[0][1], rec_jobs[1][1]],
                    [rec_jobs[0][2], rec_jobs[1][2]], self.pad_id)
                rec_sem = losses[0] * rec_jobs[0][3]
                rec_syn = losses[1] * rec_jobs[1][3]
            else:
                results = {}
                for name, zz, pp, w in rec_jobs:
                    (loss,) = sequence_predictor_loss_multi(
                        inputs, [zz], [pp], self.pad_id)
                    results[name] = loss * w
                rec_sem = results.get("rec_sem", 0.0)
                rec_syn = results.get("rec_syn", 0.0)

        losses = [adv_sem / batch_size, adv_syn / batch_size,
                  rec_sem / batch_size, rec_syn / batch_size]
        if adv:
            return tuple(losses)
        return sum(losses)


# ----------------------------------------------------------------------------
# Example run
# ----------------------------------------------------------------------------

if __name__ == "__main__":
    key = jax.random.PRNGKey(0)
    k_inp, k_syn, k_sem, k_synz, k_mod = jax.random.split(key, 5)

    B = 2            # batch
    T = 8            # sequence length (semantic tokens)
    T_SYN = 8        # sequence length (syntax tokens)
    VOCAB = 64       # decoder vocabulary
    SYN_VOCAB = 32   # syntax vocabulary
    SEM_DIM = 32     # sem_latent_dim
    SYN_DIM = 32     # syn_latent_dim
    EMB = 16         # embed_dim
    HID = 32         # hidden_dim
    PAD_ID = 0

    # token sequences, seq-first [T, B]; add SOS row and some padding
    inputs = jax.random.randint(k_inp, (T, B), 3, VOCAB, dtype=jnp.int32)
    inputs = inputs.at[0, :].set(1)                 # sos
    inputs = inputs.at[-2:, 1].set(PAD_ID)          # pad tail of batch element 1
    syn_inputs = jax.random.randint(k_syn, (T_SYN, B), 3, SYN_VOCAB, dtype=jnp.int32)
    syn_inputs = syn_inputs.at[0, :].set(1)
    syn_inputs = syn_inputs.at[-1:, 0].set(PAD_ID)

    sem_z = {"z": jax.random.normal(k_sem, (B, SEM_DIM), jnp.float32)}
    syn_z = {"z": jax.random.normal(k_synz, (B, SYN_DIM), jnp.float32)}

    module = SyntaxVAEAdversaryPallas(
        k_mod,
        sem_latent_dim=SEM_DIM, syn_latent_dim=SYN_DIM,
        embed_dim=EMB, hidden_dim=HID,
        syn_embed_dim=EMB, syn_hidden_dim=HID,
        num_tokens=VOCAB, syn_num_tokens=SYN_VOCAB,
        pad_id=PAD_ID, syn_pad_id=PAD_ID,
        adv_sem=0.5, adv_syn=0.5, rec_sem=1.0, rec_syn=1.0,
    )

    # adv=True -> tuple of 4 per-term losses (each already divided by batch)
    losses = module(sem_z, syn_z, inputs, syn_inputs, adv=True)
    losses = jax.block_until_ready(losses)

    # adv=False -> single summed loss (latents detached)
    total = module(sem_z, syn_z, inputs, syn_inputs, adv=False)
    total = jax.block_until_ready(total)

    assert all(bool(jnp.isfinite(l)) for l in losses)
    assert bool(jnp.isfinite(total))
    print("KERNEL_OK")
</pallas_src>

<mosaic_0001>
module attributes {stable_mosaic.version = 11 : i64} {
  func.func @_seq_pred_fused_kernel(%arg0: memref<7x16xi32, #tpu.memory_space<vmem>>, %arg1: memref<7x16xi32, #tpu.memory_space<vmem>>, %arg2: memref<16x32xf32, #tpu.memory_space<vmem>>, %arg3: memref<32x32xbf16, #tpu.memory_space<vmem>>, %arg4: memref<1x32xf32, #tpu.memory_space<vmem>>, %arg5: memref<128x96xbf16, #tpu.memory_space<vmem>>, %arg6: memref<1x96xf32, #tpu.memory_space<vmem>>, %arg7: memref<32x96xbf16, #tpu.memory_space<vmem>>, %arg8: memref<1x96xf32, #tpu.memory_space<vmem>>, %arg9: memref<32x128xbf16, #tpu.memory_space<vmem>>, %arg10: memref<1x128xf32, #tpu.memory_space<vmem>>, %arg11: memref<8x128xf32, #tpu.memory_space<vmem>>, %arg12: memref<112x96xf32, #tpu.memory_space<vmem>>, %arg13: memref<112x32xbf16, #tpu.memory_space<vmem>>) attributes {dimension_semantics = [], scalar_prefetch = 0 : i64, scratch_operands = 2 : i64, tpu.core_type = #tpu.core_type<tc>} {
    %c0 = arith.constant 0 : index
    %c0_0 = arith.constant 0 : index
    %0 = vector.load %arg2[%c0, %c0_0] : memref<16x32xf32, #tpu.memory_space<vmem>>, vector<16x32xf32>
    %1 = arith.truncf %0 : vector<16x32xf32> to vector<16x32xbf16>
    %c0_1 = arith.constant 0 : index
    %c0_2 = arith.constant 0 : index
    %2 = vector.load %arg3[%c0_1, %c0_2] : memref<32x32xbf16, #tpu.memory_space<vmem>>, vector<32x32xbf16>
    %cst = arith.constant dense<0.000000e+00> : vector<16x32xf32>
    %3 = tpu.matmul %1, %2, %cst {dimension_numbers = #tpu.dot_dimension_numbers<[1], [0], [0], [1], [0, 0, 1, 1], [], []>} : vector<16x32xbf16>, vector<32x32xbf16>, vector<16x32xf32> -> vector<16x32xf32>
    %c0_3 = arith.constant 0 : index
    %c0_4 = arith.constant 0 : index
    %4 = vector.load %arg4[%c0_3, %c0_4] : memref<1x32xf32, #tpu.memory_space<vmem>>, vector<1x32xf32>
    %5 = vector.broadcast %4 : vector<1x32xf32> to vector<16x32xf32>
    %6 = arith.addf %3, %5 : vector<16x32xf32>
    %7 = math.tanh %6 : vector<16x32xf32>
    %c0_5 = arith.constant 0 : index
    %c0_6 = arith.constant 0 : index
    %8 = vector.load %arg0[%c0_5, %c0_6] : memref<7x16xi32, #tpu.memory_space<vmem>>, vector<7x16xi32>
    %9 = tpu.iota {dimensions = array<i32: 2>} : vector<7x16x128xi32>
    %10 = vector.shape_cast %8 : vector<7x16xi32> to vector<7x16x1xi32>
    %11 = vector.broadcast %10 : vector<7x16x1xi32> to vector<7x16x128xi32>
    %12 = arith.cmpi eq, %11, %9 : vector<7x16x128xi32>
    %cst_7 = arith.constant 1.000000e+00 : f32
    %cst_8 = arith.constant 0.000000e+00 : f32
    %13 = vector.broadcast %cst_7 : f32 to vector<7x16x128xf32>
    %14 = vector.broadcast %cst_8 : f32 to vector<7x16x128xf32>
    %15 = arith.select %12, %13, %14 : vector<7x16x128xi1>, vector<7x16x128xf32>
    %16 = arith.truncf %15 : vector<7x16x128xf32> to vector<7x16x128xbf16>
    %17 = vector.shape_cast %16 : vector<7x16x128xbf16> to vector<112x128xbf16>
    %c0_9 = arith.constant 0 : index
    %c0_10 = arith.constant 0 : index
    %18 = vector.load %arg5[%c0_9, %c0_10] : memref<128x96xbf16, #tpu.memory_space<vmem>>, vector<128x96xbf16>
    %cst_11 = arith.constant dense<0.000000e+00> : vector<112x96xf32>
    %19 = tpu.matmul %17, %18, %cst_11 {dimension_numbers = #tpu.dot_dimension_numbers<[1], [0], [0], [1], [0, 0, 1, 1], [], []>} : vector<112x128xbf16>, vector<128x96xbf16>, vector<112x96xf32> -> vector<112x96xf32>
    %c0_12 = arith.constant 0 : index
    %c0_13 = arith.constant 0 : index
    %20 = vector.load %arg6[%c0_12, %c0_13] : memref<1x96xf32, #tpu.memory_space<vmem>>, vector<1x96xf32>
    %21 = vector.broadcast %20 : vector<1x96xf32> to vector<112x96xf32>
    %22 = arith.addf %19, %21 : vector<112x96xf32>
    %c0_14 = arith.constant 0 : index
    %c0_15 = arith.constant 0 : index
    %23 = vector.load %arg12[%c0_14, %c0_15] : memref<112x96xf32, #tpu.memory_space<vmem>>, vector<112x96xf32>
    tpu.vector_store %arg12[%c0_14, %c0_15], %22 {strides = array<i32>} : memref<112x96xf32, #tpu.memory_space<vmem>>, vector<112x96xf32>,
    %c0_16 = arith.constant 0 : index
    %c0_17 = arith.constant 0 : index
    %24 = vector.load %arg7[%c0_16, %c0_17] : memref<32x96xbf16, #tpu.memory_space<vmem>>, vector<32x96xbf16>
    %c0_18 = arith.constant 0 : index
    %c0_19 = arith.constant 0 : index
    %25 = vector.load %arg8[%c0_18, %c0_19] : memref<1x96xf32, #tpu.memory_space<vmem>>, vector<1x96xf32>
    %26 = vector.shape_cast %25 : vector<1x96xf32> to vector<1x96xf32>
    %27 = vector.broadcast %26 : vector<1x96xf32> to vector<16x96xf32>
    %c0_i32 = arith.constant 0 : i32
    %c16_i32 = arith.constant 16 : i32
    %28 = arith.muli %c0_i32, %c16_i32 : i32
    %29 = tpu.assume_multiple %28, 16 : i32
    %30 = arith.index_cast %29 : i32 to index
    %c0_20 = arith.constant 0 : index
    %31 = vector.load %arg12[%30, %c0_20] : memref<112x96xf32, #tpu.memory_space<vmem>>, vector<16x96xf32>
    %32 = arith.truncf %7 : vector<16x32xf32> to vector<16x32xbf16>
    %cst_21 = arith.constant dense<0.000000e+00> : vector<16x96xf32>
    %33 = tpu.matmul %32, %24, %cst_21 {dimension_numbers = #tpu.dot_dimension_numbers<[1], [0], [0], [1], [0, 0, 1, 1], [], []>} : vector<16x32xbf16>, vector<32x96xbf16>, vector<16x96xf32> -> vector<16x96xf32>
    %34 = arith.addf %33, %27 : vector<16x96xf32>
    %35 = vector.extract_strided_slice %31 {offsets = [0, 0], sizes = [16, 32], strides = [1, 1]} : vector<16x96xf32> to vector<16x32xf32>
    %36 = vector.extract_strided_slice %34 {offsets = [0, 0], sizes = [16, 32], strides = [1, 1]} : vector<16x96xf32> to vector<16x32xf32>
    %37 = arith.addf %35, %36 : vector<16x32xf32>
    %38 = arith.negf %37 : vector<16x32xf32>
    %39 = math.exp %38 : vector<16x32xf32>
    %cst_22 = arith.constant 1.000000e+00 : f32
    %40 = vector.broadcast %cst_22 : f32 to vector<16x32xf32>
    %41 = arith.addf %40, %39 : vector<16x32xf32>
    %42 = arith.divf %40, %41 : vector<16x32xf32>
    %43 = vector.extract_strided_slice %31 {offsets = [0, 32], sizes = [16, 32], strides = [1, 1]} : vector<16x96xf32> to vector<16x32xf32>
    %44 = vector.extract_strided_slice %34 {offsets = [0, 32], sizes = [16, 32], strides = [1, 1]} : vector<16x96xf32> to vector<16x32xf32>
    %45 = arith.addf %43, %44 : vector<16x32xf32>
    %46 = arith.negf %45 : vector<16x32xf32>
    %47 = math.exp %46 : vector<16x32xf32>
    %cst_23 = arith.constant 1.000000e+00 : f32
    %48 = vector.broadcast %cst_23 : f32 to vector<16x32xf32>
    %49 = arith.addf %48, %47 : vector<16x32xf32>
    %50 = arith.divf %48, %49 : vector<16x32xf32>
    %51 = vector.extract_strided_slice %31 {offsets = [0, 64], sizes = [16, 32], strides = [1, 1]} : vector<16x96xf32> to vector<16x32xf32>
    %52 = vector.extract_strided_slice %34 {offsets = [0, 64], sizes = [16, 32], strides = [1, 1]} : vector<16x96xf32> to vector<16x32xf32>
    %53 = arith.mulf %42, %52 : vector<16x32xf32>
    %54 = arith.addf %51, %53 : vector<16x32xf32>
    %55 = math.tanh %54 : vector<16x32xf32>
    %cst_24 = arith.constant 1.000000e+00 : f32
    %56 = vector.broadcast %cst_24 : f32 to vector<16x32xf32>
    %57 = arith.subf %56, %50 : vector<16x32xf32>
    %58 = arith.mulf %57, %55 : vector<16x32xf32>
    %59 = arith.mulf %50, %7 : vector<16x32xf32>
    %60 = arith.addf %58, %59 : vector<16x32xf32>
    %61 = arith.truncf %60 : vector<16x32xf32> to vector<16x32xbf16>
    %62 = arith.index_cast %29 : i32 to index
    %c0_25 = arith.constant 0 : index
    %63 = vector.load %arg13[%62, %c0_25] : memref<112x32xbf16, #tpu.memory_space<vmem>>, vector<16x32xbf16>
    tpu.vector_store %arg13[%62, %c0_25], %61 {strides = array<i32>} : memref<112x32xbf16, #tpu.memory_space<vmem>>, vector<16x32xbf16>,
    %c1_i32 = arith.constant 1 : i32
    %c16_i32_26 = arith.constant 16 : i32
    %64 = arith.muli %c1_i32, %c16_i32_26 : i32
    %65 = tpu.assume_multiple %64, 16 : i32
    %66 = arith.index_cast %65 : i32 to index
    %c0_27 = arith.constant 0 : index
    %67 = vector.load %arg12[%66, %c0_27] : memref<112x96xf32, #tpu.memory_space<vmem>>, vector<16x96xf32>
    %68 = arith.truncf %60 : vector<16x32xf32> to vector<16x32xbf16>
    %cst_28 = arith.constant dense<0.000000e+00> : vector<16x96xf32>
    %69 = tpu.matmul %68, %24, %cst_28 {dimension_numbers = #tpu.dot_dimension_numbers<[1], [0], [0], [1], [0, 0, 1, 1], [], []>} : vector<16x32xbf16>, vector<32x96xbf16>, vector<16x96xf32> -> vector<16x96xf32>
    %70 = arith.addf %69, %27 : vector<16x96xf32>
    %71 = vector.extract_strided_slice %67 {offsets = [0, 0], sizes = [16, 32], strides = [1, 1]} : vector<16x96xf32> to vector<16x32xf32>
    %72 = vector.extract_strided_slice %70 {offsets = [0, 0], sizes = [16, 32], strides = [1, 1]} : vector<16x96xf32> to vector<16x32xf32>
    %73 = arith.addf %71, %72 : vector<16x32xf32>
    %74 = arith.negf %73 : vector<16x32xf32>
    %75 = math.exp %74 : vector<16x32xf32>
    %cst_29 = arith.constant 1.000000e+00 : f32
    %76 = vector.broadcast %cst_29 : f32 to vector<16x32xf32>
    %77 = arith.addf %76, %75 : vector<16x32xf32>
    %78 = arith.divf %76, %77 : vector<16x32xf32>
    %79 = vector.extract_strided_slice %67 {offsets = [0, 32], sizes = [16, 32], strides = [1, 1]} : vector<16x96xf32> to vector<16x32xf32>
    %80 = vector.extract_strided_slice %70 {offsets = [0, 32], sizes = [16, 32], strides = [1, 1]} : vector<16x96xf32> to vector<16x32xf32>
    %81 = arith.addf %79, %80 : vector<16x32xf32>
    %82 = arith.negf %81 : vector<16x32xf32>
    %83 = math.exp %82 : vector<16x32xf32>
    %cst_30 = arith.constant 1.000000e+00 : f32
    %84 = vector.broadcast %cst_30 : f32 to vector<16x32xf32>
    %85 = arith.addf %84, %83 : vector<16x32xf32>
    %86 = arith.divf %84, %85 : vector<16x32xf32>
    %87 = vector.extract_strided_slice %67 {offsets = [0, 64], sizes = [16, 32], strides = [1, 1]} : vector<16x96xf32> to vector<16x32xf32>
    %88 = vector.extract_strided_slice %70 {offsets = [0, 64], sizes = [16, 32], strides = [1, 1]} : vector<16x96xf32> to vector<16x32xf32>
    %89 = arith.mulf %78, %88 : vector<16x32xf32>
    %90 = arith.addf %87, %89 : vector<16x32xf32>
    %91 = math.tanh %90 : vector<16x32xf32>
    %cst_31 = arith.constant 1.000000e+00 : f32
    %92 = vector.broadcast %cst_31 : f32 to vector<16x32xf32>
    %93 = arith.subf %92, %86 : vector<16x32xf32>
    %94 = arith.mulf %93, %91 : vector<16x32xf32>
    %95 = arith.mulf %86, %60 : vector<16x32xf32>
    %96 = arith.addf %94, %95 : vector<16x32xf32>
    %97 = arith.truncf %96 : vector<16x32xf32> to vector<16x32xbf16>
    %98 = arith.index_cast %65 : i32 to index
    %c0_32 = arith.constant 0 : index
    %99 = vector.load %arg13[%98, %c0_32] : memref<112x32xbf16, #tpu.memory_space<vmem>>, vector<16x32xbf16>
    tpu.vector_store %arg13[%98, %c0_32], %97 {strides = array<i32>} : memref<112x32xbf16, #tpu.memory_space<vmem>>, vector<16x32xbf16>,
    %c2_i32 = arith.constant 2 : i32
    %c16_i32_33 = arith.constant 16 : i32
    %100 = arith.muli %c2_i32, %c16_i32_33 : i32
    %101 = tpu.assume_multiple %100, 16 : i32
    %102 = arith.index_cast %101 : i32 to index
    %c0_34 = arith.constant 0 : index
    %103 = vector.load %arg12[%102, %c0_34] : memref<112x96xf32, #tpu.memory_space<vmem>>, vector<16x96xf32>
    %104 = arith.truncf %96 : vector<16x32xf32> to vector<16x32xbf16>
    %cst_35 = arith.constant dense<0.000000e+00> : vector<16x96xf32>
    %105 = tpu.matmul %104, %24, %cst_35 {dimension_numbers = #tpu.dot_dimension_numbers<[1], [0], [0], [1], [0, 0, 1, 1], [], []>} : vector<16x32xbf16>, vector<32x96xbf16>, vector<16x96xf32> -> vector<16x96xf32>
    %106 = arith.addf %105, %27 : vector<16x96xf32>
    %107 = vector.extract_strided_slice %103 {offsets = [0, 0], sizes = [16, 32], strides = [1, 1]} : vector<16x96xf32> to vector<16x32xf32>
    %108 = vector.extract_strided_slice %106 {offsets = [0, 0], sizes = [16, 32], strides = [1, 1]} : vector<16x96xf32> to vector<16x32xf32>
    %109 = arith.addf %107, %108 : vector<16x32xf32>
    %110 = arith.negf %109 : vector<16x32xf32>
    %111 = math.exp %110 : vector<16x32xf32>
    %cst_36 = arith.constant 1.000000e+00 : f32
    %112 = vector.broadcast %cst_36 : f32 to vector<16x32xf32>
    %113 = arith.addf %112, %111 : vector<16x32xf32>
    %114 = arith.divf %112, %113 : vector<16x32xf32>
    %115 = vector.extract_strided_slice %103 {offsets = [0, 32], sizes = [16, 32], strides = [1, 1]} : vector<16x96xf32> to vector<16x32xf32>
    %116 = vector.extract_strided_slice %106 {offsets = [0, 32], sizes = [16, 32], strides = [1, 1]} : vector<16x96xf32> to vector<16x32xf32>
    %117 = arith.addf %115, %116 : vector<16x32xf32>
    %118 = arith.negf %117 : vector<16x32xf32>
    %119 = math.exp %118 : vector<16x32xf32>
    %cst_37 = arith.constant 1.000000e+00 : f32
    %120 = vector.broadcast %cst_37 : f32 to vector<16x32xf32>
    %121 = arith.addf %120, %119 : vector<16x32xf32>
    %122 = arith.divf %120, %121 : vector<16x32xf32>
    %123 = vector.extract_strided_slice %103 {offsets = [0, 64], sizes = [16, 32], strides = [1, 1]} : vector<16x96xf32> to vector<16x32xf32>
    %124 = vector.extract_strided_slice %106 {offsets = [0, 64], sizes = [16, 32], strides = [1, 1]} : vector<16x96xf32> to vector<16x32xf32>
    %125 = arith.mulf %114, %124 : vector<16x32xf32>
    %126 = arith.addf %123, %125 : vector<16x32xf32>
    %127 = math.tanh %126 : vector<16x32xf32>
    %cst_38 = arith.constant 1.000000e+00 : f32
    %128 = vector.broadcast %cst_38 : f32 to vector<16x32xf32>
    %129 = arith.subf %128, %122 : vector<16x32xf32>
    %130 = arith.mulf %129, %127 : vector<16x32xf32>
    %131 = arith.mulf %122, %96 : vector<16x32xf32>
    %132 = arith.addf %130, %131 : vector<16x32xf32>
    %133 = arith.truncf %132 : vector<16x32xf32> to vector<16x32xbf16>
    %134 = arith.index_cast %101 : i32 to index
    %c0_39 = arith.constant 0 : index
    %135 = vector.load %arg13[%134, %c0_39] : memref<112x32xbf16, #tpu.memory_space<vmem>>, vector<16x32xbf16>
    tpu.vector_store %arg13[%134, %c0_39], %133 {strides = array<i32>} : memref<112x32xbf16, #tpu.memory_space<vmem>>, vector<16x32xbf16>,
    %c3_i32 = arith.constant 3 : i32
    %c16_i32_40 = arith.constant 16 : i32
    %136 = arith.muli %c3_i32, %c16_i32_40 : i32
    %137 = tpu.assume_multiple %136, 16 : i32
    %138 = arith.index_cast %137 : i32 to index
    %c0_41 = arith.constant 0 : index
    %139 = vector.load %arg12[%138, %c0_41] : memref<112x96xf32, #tpu.memory_space<vmem>>, vector<16x96xf32>
    %140 = arith.truncf %132 : vector<16x32xf32> to vector<16x32xbf16>
    %cst_42 = arith.constant dense<0.000000e+00> : vector<16x96xf32>
    %141 = tpu.matmul %140, %24, %cst_42 {dimension_numbers = #tpu.dot_dimension_numbers<[1], [0], [0], [1], [0, 0, 1, 1], [], []>} : vector<16x32xbf16>, vector<32x96xbf16>, vector<16x96xf32> -> vector<16x96xf32>
    %142 = arith.addf %141, %27 : vector<16x96xf32>
    %143 = vector.extract_strided_slice %139 {offsets = [0, 0], sizes = [16, 32], strides = [1, 1]} : vector<16x96xf32> to vector<16x32xf32>
    %144 = vector.extract_strided_slice %142 {offsets = [0, 0], sizes = [16, 32], strides = [1, 1]} : vector<16x96xf32> to vector<16x32xf32>
    %145 = arith.addf %143, %144 : vector<16x32xf32>
    %146 = arith.negf %145 : vector<16x32xf32>
    %147 = math.exp %146 : vector<16x32xf32>
    %cst_43 = arith.constant 1.000000e+00 : f32
    %148 = vector.broadcast %cst_43 : f32 to vector<16x32xf32>
    %149 = arith.addf %148, %147 : vector<16x32xf32>
    %150 = arith.divf %148, %149 : vector<16x32xf32>
    %151 = vector.extract_strided_slice %139 {offsets = [0, 32], sizes = [16, 32], strides = [1, 1]} : vector<16x96xf32> to vector<16x32xf32>
    %152 = vector.extract_strided_slice %142 {offsets = [0, 32], sizes = [16, 32], strides = [1, 1]} : vector<16x96xf32> to vector<16x32xf32>
    %153 = arith.addf %151, %152 : vector<16x32xf32>
    %154 = arith.negf %153 : vector<16x32xf32>
    %155 = math.exp %154 : vector<16x32xf32>
    %cst_44 = arith.constant 1.000000e+00 : f32
    %156 = vector.broadcast %cst_44 : f32 to vector<16x32xf32>
    %157 = arith.addf %156, %155 : vector<16x32xf32>
    %158 = arith.divf %156, %157 : vector<16x32xf32>
    %159 = vector.extract_strided_slice %139 {offsets = [0, 64], sizes = [16, 32], strides = [1, 1]} : vector<16x96xf32> to vector<16x32xf32>
    %160 = vector.extract_strided_slice %142 {offsets = [0, 64], sizes = [16, 32], strides = [1, 1]} : vector<16x96xf32> to vector<16x32xf32>
    %161 = arith.mulf %150, %160 : vector<16x32xf32>
    %162 = arith.addf %159, %161 : vector<16x32xf32>
    %163 = math.tanh %162 : vector<16x32xf32>
    %cst_45 = arith.constant 1.000000e+00 : f32
    %164 = vector.broadcast %cst_45 : f32 to vector<16x32xf32>
    %165 = arith.subf %164, %158 : vector<16x32xf32>
    %166 = arith.mulf %165, %163 : vector<16x32xf32>
    %167 = arith.mulf %158, %132 : vector<16x32xf32>
    %168 = arith.addf %166, %167 : vector<16x32xf32>
    %169 = arith.truncf %168 : vector<16x32xf32> to vector<16x32xbf16>
    %170 = arith.index_cast %137 : i32 to index
    %c0_46 = arith.constant 0 : index
    %171 = vector.load %arg13[%170, %c0_46] : memref<112x32xbf16, #tpu.memory_space<vmem>>, vector<16x32xbf16>
    tpu.vector_store %arg13[%170, %c0_46], %169 {strides = array<i32>} : memref<112x32xbf16, #tpu.memory_space<vmem>>, vector<16x32xbf16>,
    %c4_i32 = arith.constant 4 : i32
    %c16_i32_47 = arith.constant 16 : i32
    %172 = arith.muli %c4_i32, %c16_i32_47 : i32
    %173 = tpu.assume_multiple %172, 16 : i32
    %174 = arith.index_cast %173 : i32 to index
    %c0_48 = arith.constant 0 : index
    %175 = vector.load %arg12[%174, %c0_48] : memref<112x96xf32, #tpu.memory_space<vmem>>, vector<16x96xf32>
    %176 = arith.truncf %168 : vector<16x32xf32> to vector<16x32xbf16>
    %cst_49 = arith.constant dense<0.000000e+00> : vector<16x96xf32>
    %177 = tpu.matmul %176, %24, %cst_49 {dimension_numbers = #tpu.dot_dimension_numbers<[1], [0], [0], [1], [0, 0, 1, 1], [], []>} : vector<16x32xbf16>, vector<32x96xbf16>, vector<16x96xf32> -> vector<16x96xf32>
    %178 = arith.addf %177, %27 : vector<16x96xf32>
    %179 = vector.extract_strided_slice %175 {offsets = [0, 0], sizes = [16, 32], strides = [1, 1]} : vector<16x96xf32> to vector<16x32xf32>
    %180 = vector.extract_strided_slice %178 {offsets = [0, 0], sizes = [16, 32], strides = [1, 1]} : vector<16x96xf32> to vector<16x32xf32>
    %181 = arith.addf %179, %180 : vector<16x32xf32>
    %182 = arith.negf %181 : vector<16x32xf32>
    %183 = math.exp %182 : vector<16x32xf32>
    %cst_50 = arith.constant 1.000000e+00 : f32
    %184 = vector.broadcast %cst_50 : f32 to vector<16x32xf32>
    %185 = arith.addf %184, %183 : vector<16x32xf32>
    %186 = arith.divf %184, %185 : vector<16x32xf32>
    %187 = vector.extract_strided_slice %175 {offsets = [0, 32], sizes = [16, 32], strides = [1, 1]} : vector<16x96xf32> to vector<16x32xf32>
    %188 = vector.extract_strided_slice %178 {offsets = [0, 32], sizes = [16, 32], strides = [1, 1]} : vector<16x96xf32> to vector<16x32xf32>
    %189 = arith.addf %187, %188 : vector<16x32xf32>
    %190 = arith.negf %189 : vector<16x32xf32>
    %191 = math.exp %190 : vector<16x32xf32>
    %cst_51 = arith.constant 1.000000e+00 : f32
    %192 = vector.broadcast %cst_51 : f32 to vector<16x32xf32>
    %193 = arith.addf %192, %191 : vector<16x32xf32>
    %194 = arith.divf %192, %193 : vector<16x32xf32>
    %195 = vector.extract_strided_slice %175 {offsets = [0, 64], sizes = [16, 32], strides = [1, 1]} : vector<16x96xf32> to vector<16x32xf32>
    %196 = vector.extract_strided_slice %178 {offsets = [0, 64], sizes = [16, 32], strides = [1, 1]} : vector<16x96xf32> to vector<16x32xf32>
    %197 = arith.mulf %186, %196 : vector<16x32xf32>
    %198 = arith.addf %195, %197 : vector<16x32xf32>
    %199 = math.tanh %198 : vector<16x32xf32>
    %cst_52 = arith.constant 1.000000e+00 : f32
    %200 = vector.broadcast %cst_52 : f32 to vector<16x32xf32>
    %201 = arith.subf %200, %194 : vector<16x32xf32>
    %202 = arith.mulf %201, %199 : vector<16x32xf32>
    %203 = arith.mulf %194, %168 : vector<16x32xf32>
    %204 = arith.addf %202, %203 : vector<16x32xf32>
    %205 = arith.truncf %204 : vector<16x32xf32> to vector<16x32xbf16>
    %206 = arith.index_cast %173 : i32 to index
    %c0_53 = arith.constant 0 : index
    %207 = vector.load %arg13[%206, %c0_53] : memref<112x32xbf16, #tpu.memory_space<vmem>>, vector<16x32xbf16>
    tpu.vector_store %arg13[%206, %c0_53], %205 {strides = array<i32>} : memref<112x32xbf16, #tpu.memory_space<vmem>>, vector<16x32xbf16>,
    %c5_i32 = arith.constant 5 : i32
    %c16_i32_54 = arith.constant 16 : i32
    %208 = arith.muli %c5_i32, %c16_i32_54 : i32
    %209 = tpu.assume_multiple %208, 16 : i32
    %210 = arith.index_cast %209 : i32 to index
    %c0_55 = arith.constant 0 : index
    %211 = vector.load %arg12[%210, %c0_55] : memref<112x96xf32, #tpu.memory_space<vmem>>, vector<16x96xf32>
    %212 = arith.truncf %204 : vector<16x32xf32> to vector<16x32xbf16>
    %cst_56 = arith.constant dense<0.000000e+00> : vector<16x96xf32>
    %213 = tpu.matmul %212, %24, %cst_56 {dimension_numbers = #tpu.dot_dimension_numbers<[1], [0], [0], [1], [0, 0, 1, 1], [], []>} : vector<16x32xbf16>, vector<32x96xbf16>, vector<16x96xf32> -> vector<16x96xf32>
    %214 = arith.addf %213, %27 : vector<16x96xf32>
    %215 = vector.extract_strided_slice %211 {offsets = [0, 0], sizes = [16, 32], strides = [1, 1]} : vector<16x96xf32> to vector<16x32xf32>
    %216 = vector.extract_strided_slice %214 {offsets = [0, 0], sizes = [16, 32], strides = [1, 1]} : vector<16x96xf32> to vector<16x32xf32>
    %217 = arith.addf %215, %216 : vector<16x32xf32>
    %218 = arith.negf %217 : vector<16x32xf32>
    %219 = math.exp %218 : vector<16x32xf32>
    %cst_57 = arith.constant 1.000000e+00 : f32
    %220 = vector.broadcast %cst_57 : f32 to vector<16x32xf32>
    %221 = arith.addf %220, %219 : vector<16x32xf32>
    %222 = arith.divf %220, %221 : vector<16x32xf32>
    %223 = vector.extract_strided_slice %211 {offsets = [0, 32], sizes = [16, 32], strides = [1, 1]} : vector<16x96xf32> to vector<16x32xf32>
    %224 = vector.extract_strided_slice %214 {offsets = [0, 32], sizes = [16, 32], strides = [1, 1]} : vector<16x96xf32> to vector<16x32xf32>
    %225 = arith.addf %223, %224 : vector<16x32xf32>
    %226 = arith.negf %225 : vector<16x32xf32>
    %227 = math.exp %226 : vector<16x32xf32>
    %cst_58 = arith.constant 1.000000e+00 : f32
    %228 = vector.broadcast %cst_58 : f32 to vector<16x32xf32>
    %229 = arith.addf %228, %227 : vector<16x32xf32>
    %230 = arith.divf %228, %229 : vector<16x32xf32>
    %231 = vector.extract_strided_slice %211 {offsets = [0, 64], sizes = [16, 32], strides = [1, 1]} : vector<16x96xf32> to vector<16x32xf32>
    %232 = vector.extract_strided_slice %214 {offsets = [0, 64], sizes = [16, 32], strides = [1, 1]} : vector<16x96xf32> to vector<16x32xf32>
    %233 = arith.mulf %222, %232 : vector<16x32xf32>
    %234 = arith.addf %231, %233 : vector<16x32xf32>
    %235 = math.tanh %234 : vector<16x32xf32>
    %cst_59 = arith.constant 1.000000e+00 : f32
    %236 = vector.broadcast %cst_59 : f32 to vector<16x32xf32>
    %237 = arith.subf %236, %230 : vector<16x32xf32>
    %238 = arith.mulf %237, %235 : vector<16x32xf32>
    %239 = arith.mulf %230, %204 : vector<16x32xf32>
    %240 = arith.addf %238, %239 : vector<16x32xf32>
    %241 = arith.truncf %240 : vector<16x32xf32> to vector<16x32xbf16>
    %242 = arith.index_cast %209 : i32 to index
    %c0_60 = arith.constant 0 : index
    %243 = vector.load %arg13[%242, %c0_60] : memref<112x32xbf16, #tpu.memory_space<vmem>>, vector<16x32xbf16>
    tpu.vector_store %arg13[%242, %c0_60], %241 {strides = array<i32>} : memref<112x32xbf16, #tpu.memory_space<vmem>>, vector<16x32xbf16>,
    %c6_i32 = arith.constant 6 : i32
    %c16_i32_61 = arith.constant 16 : i32
    %244 = arith.muli %c6_i32, %c16_i32_61 : i32
    %245 = tpu.assume_multiple %244, 16 : i32
    %246 = arith.index_cast %245 : i32 to index
    %c0_62 = arith.constant 0 : index
    %247 = vector.load %arg12[%246, %c0_62] : memref<112x96xf32, #tpu.memory_space<vmem>>, vector<16x96xf32>
    %248 = arith.truncf %240 : vector<16x32xf32> to vector<16x32xbf16>
    %cst_63 = arith.constant dense<0.000000e+00> : vector<16x96xf32>
    %249 = tpu.matmul %248, %24, %cst_63 {dimension_numbers = #tpu.dot_dimension_numbers<[1], [0], [0], [1], [0, 0, 1, 1], [], []>} : vector<16x32xbf16>, vector<32x96xbf16>, vector<16x96xf32> -> vector<16x96xf32>
    %250 = arith.addf %249, %27 : vector<16x96xf32>
    %251 = vector.extract_strided_slice %247 {offsets = [0, 0], sizes = [16, 32], strides = [1, 1]} : vector<16x96xf32> to vector<16x32xf32>
    %252 = vector.extract_strided_slice %250 {offsets = [0, 0], sizes = [16, 32], strides = [1, 1]} : vector<16x96xf32> to vector<16x32xf32>
    %253 = arith.addf %251, %252 : vector<16x32xf32>
    %254 = arith.negf %253 : vector<16x32xf32>
    %255 = math.exp %254 : vector<16x32xf32>
    %cst_64 = arith.constant 1.000000e+00 : f32
    %256 = vector.broadcast %cst_64 : f32 to vector<16x32xf32>
    %257 = arith.addf %256, %255 : vector<16x32xf32>
    %258 = arith.divf %256, %257 : vector<16x32xf32>
    %259 = vector.extract_strided_slice %247 {offsets = [0, 32], sizes = [16, 32], strides = [1, 1]} : vector<16x96xf32> to vector<16x32xf32>
    %260 = vector.extract_strided_slice %250 {offsets = [0, 32], sizes = [16, 32], strides = [1, 1]} : vector<16x96xf32> to vector<16x32xf32>
    %261 = arith.addf %259, %260 : vector<16x32xf32>
    %262 = arith.negf %261 : vector<16x32xf32>
    %263 = math.exp %262 : vector<16x32xf32>
    %cst_65 = arith.constant 1.000000e+00 : f32
    %264 = vector.broadcast %cst_65 : f32 to vector<16x32xf32>
    %265 = arith.addf %264, %263 : vector<16x32xf32>
    %266 = arith.divf %264, %265 : vector<16x32xf32>
    %267 = vector.extract_strided_slice %247 {offsets = [0, 64], sizes = [16, 32], strides = [1, 1]} : vector<16x96xf32> to vector<16x32xf32>
    %268 = vector.extract_strided_slice %250 {offsets = [0, 64], sizes = [16, 32], strides = [1, 1]} : vector<16x96xf32> to vector<16x32xf32>
    %269 = arith.mulf %258, %268 : vector<16x32xf32>
    %270 = arith.addf %267, %269 : vector<16x32xf32>
    %271 = math.tanh %270 : vector<16x32xf32>
    %cst_66 = arith.constant 1.000000e+00 : f32
    %272 = vector.broadcast %cst_66 : f32 to vector<16x32xf32>
    %273 = arith.subf %272, %266 : vector<16x32xf32>
    %274 = arith.mulf %273, %271 : vector<16x32xf32>
    %275 = arith.mulf %266, %240 : vector<16x32xf32>
    %276 = arith.addf %274, %275 : vector<16x32xf32>
    %277 = arith.truncf %276 : vector<16x32xf32> to vector<16x32xbf16>
    %278 = arith.index_cast %245 : i32 to index
    %c0_67 = arith.constant 0 : index
    %279 = vector.load %arg13[%278, %c0_67] : memref<112x32xbf16, #tpu.memory_space<vmem>>, vector<16x32xbf16>
    tpu.vector_store %arg13[%278, %c0_67], %277 {strides = array<i32>} : memref<112x32xbf16, #tpu.memory_space<vmem>>, vector<16x32xbf16>,
    %c7_i32 = arith.constant 7 : i32
    %c0_68 = arith.constant 0 : index
    %c0_69 = arith.constant 0 : index
    %280 = vector.load %arg13[%c0_68, %c0_69] : memref<112x32xbf16, #tpu.memory_space<vmem>>, vector<112x32xbf16>
    %c0_70 = arith.constant 0 : index
    %c0_71 = arith.constant 0 : index
    %281 = vector.load %arg9[%c0_70, %c0_71] : memref<32x128xbf16, #tpu.memory_space<vmem>>, vector<32x128xbf16>
    %cst_72 = arith.constant dense<0.000000e+00> : vector<112x128xf32>
    %282 = tpu.matmul %280, %281, %cst_72 {dimension_numbers = #tpu.dot_dimension_numbers<[1], [0], [0], [1], [0, 0, 1, 1], [], []>} : vector<112x32xbf16>, vector<32x128xbf16>, vector<112x128xf32> -> vector<112x128xf32>
    %c0_73 = arith.constant 0 : index
    %c0_74 = arith.constant 0 : index
    %283 = vector.load %arg10[%c0_73, %c0_74] : memref<1x128xf32, #tpu.memory_space<vmem>>, vector<1x128xf32>
    %284 = vector.broadcast %283 : vector<1x128xf32> to vector<112x128xf32>
    %285 = arith.addf %282, %284 : vector<112x128xf32>
    %c0_75 = arith.constant 0 : index
    %c0_76 = arith.constant 0 : index
    %286 = vector.load %arg1[%c0_75, %c0_76] : memref<7x16xi32, #tpu.memory_space<vmem>>, vector<7x16xi32>
    %287 = vector.shape_cast %286 : vector<7x16xi32> to vector<7x16x1xi32>
    %288 = tpu.iota {dimensions = array<i32: 2>} : vector<7x16x128xi32>
    %289 = vector.broadcast %287 : vector<7x16x1xi32> to vector<7x16x128xi32>
    %290 = arith.cmpi eq, %289, %288 : vector<7x16x128xi32>
    %c0_i32_77 = arith.constant 0 : i32
    %291 = vector.broadcast %c0_i32_77 : i32 to vector<7x16x1xi32>
    %292 = arith.cmpi ne, %287, %291 : vector<7x16x1xi32>
    %293 = vector.broadcast %292 : vector<7x16x1xi1> to vector<7x16x128xi1>
    %294 = arith.andi %290, %293 : vector<7x16x128xi1>
    %cst_78 = arith.constant 1.000000e+00 : f32
    %cst_79 = arith.constant 0.000000e+00 : f32
    %295 = vector.broadcast %cst_78 : f32 to vector<7x16x128xf32>
    %296 = vector.broadcast %cst_79 : f32 to vector<7x16x128xf32>
    %297 = arith.select %294, %295, %296 : vector<7x16x128xi1>, vector<7x16x128xf32>
    %298 = vector.shape_cast %297 : vector<7x16x128xf32> to vector<112x128xf32>
    %cst_80 = arith.constant 0.000000e+00 : f32
    %299 = vector.broadcast %cst_80 : f32 to vector<8x128xf32>
    %300 = tpu.iota {dimensions = array<i32: 0>} : vector<8x128xi32>
    %cst_81 = arith.constant dense<0xFF800000> : vector<112xf32>
    %301 = vector.multi_reduction <maximumf>, %285, %cst_81 [1] : vector<112x128xf32> to vector<112xf32>
    %302 = vector.shape_cast %301 : vector<112xf32> to vector<112x1xf32>
    %303 = vector.broadcast %302 : vector<112x1xf32> to vector<112x128xf32>
    %304 = arith.subf %285, %303 : vector<112x128xf32>
    %305 = math.exp %304 : vector<112x128xf32>
    %cst_82 = arith.constant dense<0.000000e+00> : vector<112xf32>
    %306 = vector.multi_reduction <add>, %305, %cst_82 [1] : vector<112x128xf32> to vector<112xf32>
    %307 = vector.shape_cast %306 : vector<112xf32> to vector<112x1xf32>
    %308 = math.log %307 : vector<112x1xf32>
    %309 = arith.addf %302, %308 : vector<112x1xf32>
    %310 = vector.broadcast %309 : vector<112x1xf32> to vector<112x128xf32>
    %311 = arith.subf %310, %285 : vector<112x128xf32>
    %312 = arith.mulf %298, %311 : vector<112x128xf32>
    %313 = vector.shape_cast %312 : vector<112x128xf32> to vector<1x112x128xf32>
    %cst_83 = arith.constant dense<0.000000e+00> : vector<1xf32>
    %314 = vector.multi_reduction <add>, %313, %cst_83 [1, 2] : vector<1x112x128xf32> to vector<1xf32>
    %315 = vector.shape_cast %314 : vector<1xf32> to vector<1x1x1xf32>
    %316 = vector.extract %315[0, 0, 0] : f32 from vector<1x1x1xf32>
    %c0_i32_84 = arith.constant 0 : i32
    %317 = vector.broadcast %c0_i32_84 : i32 to vector<8x128xi32>
    %318 = arith.cmpi eq, %300, %317 : vector<8x128xi32>
    %cst_85 = arith.constant 0.000000e+00 : f32
    %319 = vector.broadcast %316 : f32 to vector<8x128xf32>
    %320 = vector.broadcast %cst_85 : f32 to vector<8x128xf32>
    %321 = arith.select %318, %319, %320 : vector<8x128xi1>, vector<8x128xf32>
    %322 = arith.addf %299, %321 : vector<8x128xf32>
    %c0_86 = arith.constant 0 : index
    %c0_87 = arith.constant 0 : index
    %323 = vector.load %arg11[%c0_86, %c0_87] : memref<8x128xf32, #tpu.memory_space<vmem>>, vector<8x128xf32>
    tpu.vector_store %arg11[%c0_86, %c0_87], %322 {strides = array<i32>} : memref<8x128xf32, #tpu.memory_space<vmem>>, vector<8x128xf32>,
    return
  }
}

</mosaic_0001>

<bundles_post_ra>
// kernel: tpu_custom_call.1
= control target key start
LH: loop header
LB: loop body
LE: loop exit
PB: predicated region body
PF: predicated region fallthrough
CT: control target
= control target key end

     0   :  { %v114_v1 = vlaneseq  ;;  %v2134_v2 = vmov 0.0   ;;  %vm2135_vm0 = vmmov 0   ;;  %vm66_vm1 = vcmask 261120   ;;  %s2823_s0 = inlined_call_operand.vmem [shape: s32[7,16], index: 0, kind: input, shape index: {}]   ;;  %s2824_s1 = inlined_call_operand.vmem [shape: s32[7,16], index: 1, kind: input, shape index: {}]   ;;  %s2825_s2 = inlined_call_operand.vmem [shape: f32[16,32], index: 2, kind: input, shape index: {}]   ;;  %s2826_s3 = inlined_call_operand.vmem [shape: bf16[32,32], index: 3, kind: input, shape index: {}]   ;;  %s2827_s4 = inlined_call_operand.vmem [shape: f32[1,32], index: 4, kind: input, shape index: {}]   ;;  %s2828_s5 = inlined_call_operand.vmem [shape: bf16[128,96], index: 5, kind: input, shape index: {}]   ;;  %s2829_s6 = inlined_call_operand.vmem [shape: f32[1,96], index: 6, kind: input, shape index: {}]   ;;  %s2830_s7 = inlined_call_operand.vmem [shape: bf16[32,96], index: 7, kind: input, shape index: {}]   ;;  %s2831_s8 = inlined_call_operand.vmem [shape: f32[1,96], index: 8, kind: input, shape index: {}]   ;;  %s2832_s9 = inlined_call_operand.vmem [shape: bf16[32,128], index: 9, kind: input, shape index: {}]   ;;  %s2833_s10 = inlined_call_operand.vmem [shape: f32[1,128], index: 10, kind: input, shape index: {}]   ;;  %s2834_s11 = inlined_call_operand.hbm [shape: f32[8,128], index: 11, kind: output, shape index: {}]  }
   0x1   :  { %v1950_v0 = vld [vmem:[%s2826_s3] sm:$0xff]   ;;  %1797 = vmatprep.subr.bf16.mxu0 %v2134_v2  ;;  %1805 = vmatprep.subr.bf16.mxu1 %v2134_v2  ;;  %v1951_v3 = vld [vmem:[%s2826_s3 + $0x8] sm:$0xff]   ;;  %v1954_v13 = vld [vmem:[%s2828_s5 + $0x10] sm:$0xff]  }
   0x2   :  { %1798 = vmatpush3.bf16.msra.mxu0 %v1950_v0  ;;  %1801 = vmatprep.mubr.msk.bf16.mxu0 %vm2135_vm0, %v2134_v2  ;;  %v40_v4 = vld [vmem:[%s2825_s2] sm:$0xff]  ;;  %v41_v5 = vld [vmem:[%s2825_s2 + $0x8] sm:$0xff]  ;;  %v2218_v6 = vshrl.u32 %v114_v1, 7  ;;  %v1955_v14 = vld [vmem:[%s2828_s5 + $0x18] sm:$0xff]  }
   0x3   :  { %1799 = vmatprep.subr.bf16.mxu0 %v2134_v2  ;;  %v1952_v7 = vld [vmem:[%s2828_s5] sm:$0xff]   ;;  %1821 = vmatprep.mubr.msk.bf16.mxu1 %vm2135_vm0, %v2134_v2  ;;  %v42_v9 = vpack.c.bf16 %v41_v5, %v40_v4  ;;  %v1953_v11 = vld [vmem:[%s2828_s5 + $0x8] sm:$0xff]  }
   0x4   :  { %v2228_v8 = vld [vmem:[%s2823_s0] sm:$0x7f]  ;;  %v118_v10 = vsub.s32 0, %v2218_v6  ;;  %1806 = vmatpush3.bf16.msra.mxu1 %v1952_v7 }
   0x5   :  { %1807 = vmatprep.subr.bf16.mxu1 %v2134_v2 }
   0x6   :  { %1800 = vmatpush3.bf16.msra.mxu0 %v1951_v3  ;;  %v119_v12 = vrot.slane %v2228_v8, %v118_v10 }
   0x7   :  { %1849 = vmatprep.subr.bf16.mxu0 %v2134_v2 }
   0x8   :  { %121 = vbcast.lane.b32.xlu0 %v119_v12, 256  ;;  %1808 = vmatpush3.bf16.msra.mxu1 %v1953_v11 }
   0x9   :  { %1802 = vmatmul.mubr.msk.bf16.vlgmr.msra.gmra.mrb[0].mxu0 %vm66_vm1, %v42_v9  ;;  %1809 = vmatprep.subr.bf16.mxu1 %v2134_v2 }
   0xa   :  { %1853 = vmatprep.mubr.msk.bf16.mxu0 %vm2135_vm0, %v2134_v2 }
   0xc   :  { %125 = vbcast.lane.b32.xlu0 %v119_v12, 264  ;;  %1810 = vmatpush3.bf16.msra.mxu1 %v1954_v13 }
   0xd   :  { %16 = vsyncpa [#allocation5], 0  ;;  %1811 = vmatprep.subr.bf16.mxu1 %v2134_v2  ;;  %v1956_v15 = vld [vmem:[%s2828_s5 + $0x20] sm:$0xff]   ;;  %v1957_v16 = vld [vmem:[%s2828_s5 + $0x28] sm:$0xff]   ;;  %v2281_v21 = vand.u32 127, %v114_v1  ;;  %vm388_vm5 = vcmask 785408  }
   0xe   :  { %v1958_v17 = vld [vmem:[%s2828_s5 + $0x30] sm:$0xff]   ;;  %v1959_v18 = vld [vmem:[%s2828_s5 + $0x38] sm:$0xff]   ;;  %v2269_v19 = vld [vmem:[%s2830_s7] sm:$0xff]   ;;  %v2136_v24 = vmov 1.0|1.0   ;;  %s2137_s2 = smov 64  }
   0xf   :  { %1850 = vmatpush3.bf16.msra.mxu0 %v2269_v19  ;;  %v2275_v20 = vld [vmem:[%s2830_s7 + $0x8] sm:$0xff]   ;;  %v1688_v25 = vld [vmem:[%s2827_s4] ss:$0 sm:$0xff]  ;;  %s2139_s28 = smov 32   ;;  %v129_v11 = vsub.s32 1, %v2218_v6 }
  0x10   :  { %1812 = vmatpush3.bf16.msra.mxu1 %v1955_v14  ;;  %1851 = vmatprep.subr.bf16.mxu0 %v2134_v2  ;;  %v2304_v35 = vld [vmem:[%s2829_s6] ss:$0 sm:$0xff] }
  0x11   :  { %1813 = vmatprep.subr.bf16.mxu1 %v2134_v2  ;;  %v2313_v42 = vld [vmem:[%s2831_s8] ss:$0 sm:$0xff]  ;;  %s2138_s8 = smov 96   ;;  %v130_v12 = vrot.slane %v2228_v8, %v129_v11 }
  0x13   :  { %1852 = vmatpush3.bf16.msra.mxu0 %v2275_v20 }
  0x14   :  { %1814 = vmatpush3.bf16.msra.mxu1 %v1956_v15  ;;  %1857 = vmatprep.subr.bf16.mxu0 %v2134_v2 }
  0x15   :  { %1815 = vmatprep.subr.bf16.mxu1 %v2134_v2 }
  0x18   :  { %1816 = vmatpush3.bf16.msra.mxu1 %v1957_v16 }
  0x19   :  { %1817 = vmatprep.subr.bf16.mxu1 %v2134_v2 }
  0x1c   :  { %1818 = vmatpush3.bf16.msra.mxu1 %v1958_v17 }
  0x1d   :  { %1819 = vmatprep.subr.bf16.mxu1 %v2134_v2 }
  0x20   :  { %1820 = vmatpush3.bf16.msra.mxu1 %v1959_v18 }
  0x21   :  { %1937 = vmatprep.subr.bf16.mxu1 %v2134_v2 }
  0x7a   :  { %v122_v22 = vpop.permute.xlu0 %121 }
  0x7b   :  { %vm193_vm2 = vcmp.eq.s32.totalorder %v122_v22, %v2281_v21 }
  0x7e   :  { %v126_v23 = vpop.permute.xlu0 %125 }
  0x7f   :  { %vm194_vm3 = vcmp.eq.s32.totalorder %v126_v23, %v2281_v21 }
  0x80   :  { %vm1701_vm4 = vmpackc.low %vm194_vm3, %vm193_vm2 }
  0x81   :  { %1822 = vmatmul.mubr.msk.bf16.vlgmr.msra.gmra.mrb[0].mxu1 %vm1701_vm4, %v2136_v24 }
  0x82   :  { %1825 = vmatprep.mubr.msk.bf16.mxu1 %vm2135_vm0, %v2134_v2 }
  0xdc   :  { %v104_v26 = vpop.f32.mrb[0].mxu0 }
  0xdd   :  { %v105_v27 = vadd.f32 %v1688_v25, %v104_v26  ;;  %v1803_v28 = vpop.f32.mrb[1].mxu0 }
  0xde   :  { %v107_v29 = vpop.f32.mrb[2].mxu0 }
  0xdf   :  { %v108_v30 = vadd.f32 %v1688_v25, %v107_v29  ;;  %v1804_v31 = vpop.f32.mrb[3].mxu0  ;;  %1964 = vtanh.f32 %v105_v27 }
  0xe1   :  { %1966 = vtanh.f32 %v108_v30 }
  0xe9   :  { %v1965_v32 = vpop.eup %1964 }
  0xeb   :  { %v2291_v33 = vpop.eup %1966 }
  0xec   :  { %v416_v34 = vpack.c.bf16 %v2291_v33, %v1965_v32 }
  0xee   :  { %1854 = vmatmul.mubr.msk.bf16.vlgmr.msra.gmra.mrb[4].mxu0 %vm66_vm1, %v416_v34 }
  0xef   :  { %1858 = vmatpush3.bf16.msra.mxu0 %v2269_v19  ;;  %1861 = vmatprep.mubr.msk.bf16.mxu0 %vm2135_vm0, %v2134_v2 }
  0xf0   :  { %1859 = vmatprep.subr.bf16.mxu0 %v2134_v2 }
  0xf3   :  { %1860 = vmatpush3.bf16.msra.mxu0 %v2275_v20 }
  0xf4   :  { %1865 = vmatprep.subr.bf16.mxu0 %v2134_v2 }
 0x154   :  { %v333_v36 = vpop.f32.mrb[0].mxu1 }
 0x155   :  { %v334_v37 = vadd.f32 %v2304_v35, %v333_v36  ;;  %v1823_v38 = vpop.f32.mrb[1].mxu1 }
 0x156   :  { %v336_v39 = vpop.f32.mrb[2].mxu1 }
 0x157   :  { %389 = vst.msk [vmem:[#allocation2] sm:$0xff] %vm388_vm5, %v334_v37  ;;  %v337_v40 = vadd.f32 %v2304_v35, %v336_v39  ;;  %v1824_v41 = vpop.f32.mrb[3].mxu1 }
 0x159   :  { %390 = vst.msk [vmem:[#allocation2 + $0x8] sm:$0xff] %vm388_vm5, %v337_v40 }
 0x15e   :  { %v414_v49 = vld [vmem:[#allocation2] sm:$0xff] }
 0x160   :  { %v415_v51 = vld [vmem:[#allocation2 + $0x8] sm:$0xff] }
 0x1c1   :  { %v466_v43 = vpop.f32.mrb[4].mxu0 }
 0x1c2   :  { %v467_v44 = vadd.f32 %v2313_v42, %v466_v43  ;;  %v1855_v45 = vpop.f32.mrb[5].mxu0 }
 0x1c3   :  { %v469_v46 = vpop.f32.mrb[6].mxu0 }
 0x1c4   :  { %489 = vrot.lane.b32.xlu1 %v467_v44, %s2137_s2  ;;  %v1856_v47 = vpop.f32.mrb[7].mxu0  ;;  %v470_v48 = vadd.f32 %v2313_v42, %v469_v46  ;;  %v473_v50 = vadd.f32 %v467_v44, %v414_v49 }
 0x1c6   :  { %v1719_v52 = vmul.f32 -1.442695, %v473_v50  ;;  %v474_v53 = vadd.f32 %v470_v48, %v415_v51 }
 0x1c8   :  { %491 = vrot.lane.b32.xlu1 %v470_v48, %s2137_s2  ;;  %1968 = vpow2.f32 %v1719_v52  ;;  %v1720_v54 = vmul.f32 -1.442695, %v474_v53 }
 0x1ca   :  { %1970 = vpow2.f32 %v1720_v54 }
 0x1d2   :  { %v1969_v55 = vpop.eup %1968 }
 0x1d3   :  { %v481_v56 = vadd.f32 1.0, %v1969_v55 }
 0x1d4   :  { %v1971_v57 = vpop.eup %1970 }
 0x1d5   :  { %1972 = vrcp.f32 %v481_v56  ;;  %v482_v58 = vadd.f32 1.0, %v1971_v57 }
 0x1d7   :  { %1974 = vrcp.f32 %v482_v58 }
 0x1df   :  { %v1973_v59 = vpop.eup %1972 }
 0x1e0   :  { %v509_v16 = vsub.f32 1.0, %v1973_v59 }
 0x1e1   :  { %v1975_v62 = vpop.eup %1974 }
 0x1e2   :  { %v510_v18 = vsub.f32 1.0, %v1975_v62 }
 0x236   :  { %v490_v60 = vpop.permute.xlu1 %489 }
 0x237   :  { %v495_v61 = vmul.f32 %v1973_v59, %v490_v60 }
 0x239   :  { %499 = vrot.lane.b32.xlu0 %v495_v61, %s2137_s2 }
 0x23a   :  { %v492_v63 = vpop.permute.xlu1 %491 }
 0x23b   :  { %v496_v0 = vmul.f32 %v1975_v62, %v492_v63 }
 0x23d   :  { %501 = vrot.lane.b32.xlu1 %v496_v0, %s2137_s2 }
 0x2ab   :  { %v500_v1 = vpop.permute.xlu0 %499 }
 0x2ac   :  { %v505_v3 = vadd.f32 %v500_v1, %v414_v49 }
 0x2ae   :  { %1976 = vtanh.f32 %v505_v3 }
 0x2af   :  { %v502_v4 = vpop.permute.xlu1 %501 }
 0x2b0   :  { %v506_v5 = vadd.f32 %v502_v4, %v415_v51  ;;  %v140_v4 = vsub.s32 2, %v2218_v6 }
 0x2b2   :  { %1978 = vtanh.f32 %v506_v5 }
 0x2b8   :  { %v1977_v7 = vpop.eup %1976 }
 0x2b9   :  { %513 = vrot.lane.b32.xlu0 %v1977_v7, %s2138_s8 }
 0x2bc   :  { %v1979_v9 = vpop.eup %1978 }
 0x2bd   :  { %523 = vrot.lane.b32.xlu0 %v1965_v32, %s2139_s28  ;;  %515 = vrot.lane.b32.xlu1 %v1979_v9, %s2138_s8  ;;  %v141_v9 = vrot.slane %v2228_v8, %v140_v4 }
 0x2c1   :  { %525 = vrot.lane.b32.xlu1 %v2291_v33, %s2139_s28 }
 0x2c5   :  { %132 = vbcast.lane.b32.xlu1 %v130_v12, 256 }
 0x32b   :  { %v514_v13 = vpop.permute.xlu0 %513 }
 0x32c   :  { %v519_v23 = vmul.f32 %v514_v13, %v509_v16 }
 0x32f   :  { %v524_v14 = vpop.permute.xlu0 %523  ;;  %v516_v15 = vpop.permute.xlu1 %515 }
 0x330   :  { %v529_v17 = vmul.f32 %v1973_v59, %v524_v14  ;;  %v520_v25 = vmul.f32 %v516_v15, %v510_v18 }
 0x332   :  { %v2328_v27 = vadd.f32 %v529_v17, %v519_v23 }
 0x333   :  { %v526_v22 = vpop.permute.xlu1 %525 }
 0x334   :  { %v530_v26 = vmul.f32 %v1975_v62, %v526_v22 }
 0x336   :  { %v2330_v28 = vadd.f32 %v530_v26, %v520_v25 }
 0x337   :  { %v133_v31 = vpop.permute.xlu1 %132 }
 0x338   :  { %v533_v29 = vpack.c.bf16 %v2330_v28, %v2328_v27  ;;  %vm195_vm6 = vcmp.eq.s32.totalorder %v133_v31, %v2281_v21 }
 0x33a   :  { %535 = vrot.lane.b32.xlu0 %v533_v29, %s2138_s8 }
 0x33e   :  { %136 = vbcast.lane.b32.xlu0 %v130_v12, 264 }
 0x3ac   :  { %v536_v30 = vpop.permute.xlu0 %535 }
 0x3ad   :  { %538 = vst.msk [vmem:[#allocation3] sm:$0xff] %vm66_vm1, %v536_v30  ;;  %1862 = vmatmul.mubr.msk.bf16.vlgmr.msra.gmra.mrb[8].mxu0 %vm66_vm1, %v536_v30 }
 0x3ae   :  { %1866 = vmatpush3.bf16.msra.mxu0 %v2269_v19  ;;  %1869 = vmatprep.mubr.msk.bf16.mxu0 %vm2135_vm0, %v2134_v2 }
 0x3af   :  { %1867 = vmatprep.subr.bf16.mxu0 %v2134_v2 }
 0x3b0   :  { %v137_v32 = vpop.permute.xlu0 %136 }
 0x3b1   :  { %vm196_vm7 = vcmp.eq.s32.totalorder %v137_v32, %v2281_v21 }
 0x3b2   :  { %vm1703_vm8 = vmpackc.low %vm196_vm7, %vm195_vm6  ;;  %1868 = vmatpush3.bf16.msra.mxu0 %v2275_v20 }
 0x3b3   :  { %1826 = vmatmul.mubr.msk.bf16.gmra.mrb[4].mxu1 %vm1703_vm8, %v2136_v24  ;;  %1873 = vmatprep.subr.bf16.mxu0 %v2134_v2 }
 0x3b4   :  { %1829 = vmatprep.mubr.msk.bf16.mxu1 %vm2135_vm0, %v2134_v2 }
 0x480   :  { %v579_v33 = vpop.f32.mrb[8].mxu0 }
 0x481   :  { %v580_v34 = vadd.f32 %v2313_v42, %v579_v33  ;;  %v1863_v36 = vpop.f32.mrb[9].mxu0 }
 0x482   :  { %v582_v37 = vpop.f32.mrb[10].mxu0 }
 0x483   :  { %v583_v38 = vadd.f32 %v2313_v42, %v582_v37  ;;  %602 = vrot.lane.b32.xlu1 %v580_v34, %s2137_s2  ;;  %v1864_v39 = vpop.f32.mrb[11].mxu0 }
 0x485   :  { %604 = vrot.lane.b32.xlu0 %v583_v38, %s2137_s2 }
 0x486   :  { %v341_v40 = vpop.f32.mrb[4].mxu1 }
 0x487   :  { %v342_v41 = vadd.f32 %v2304_v35, %v341_v40  ;;  %v1827_v43 = vpop.f32.mrb[5].mxu1 }
 0x488   :  { %v344_v44 = vpop.f32.mrb[6].mxu1 }
 0x489   :  { %391 = vst.msk [vmem:[#allocation2 + $0x10] sm:$0xff] %vm388_vm5, %v342_v41  ;;  %v345_v45 = vadd.f32 %v2304_v35, %v344_v44  ;;  %v1828_v46 = vpop.f32.mrb[7].mxu1 }
 0x48b   :  { %392 = vst.msk [vmem:[#allocation2 + $0x18] sm:$0xff] %vm388_vm5, %v345_v45 }
 0x490   :  { %v540_v47 = vld [vmem:[#allocation2 + $0x10] sm:$0xff] }
 0x491   :  { %v586_v49 = vadd.f32 %v580_v34, %v540_v47 }
 0x492   :  { %v541_v48 = vld [vmem:[#allocation2 + $0x18] sm:$0xff] }
 0x493   :  { %v587_v50 = vadd.f32 %v583_v38, %v541_v48  ;;  %v1722_v51 = vmul.f32 -1.442695, %v586_v49 }
 0x495   :  { %v1723_v52 = vmul.f32 -1.442695, %v587_v50  ;;  %1980 = vpow2.f32 %v1722_v51 }
 0x497   :  { %1982 = vpow2.f32 %v1723_v52 }
 0x49f   :  { %v1981_v53 = vpop.eup %1980 }
 0x4a0   :  { %v594_v55 = vadd.f32 1.0, %v1981_v53 }
 0x4a1   :  { %v1983_v54 = vpop.eup %1982 }
 0x4a2   :  { %v595_v56 = vadd.f32 1.0, %v1983_v54  ;;  %1984 = vrcp.f32 %v594_v55 }
 0x4a4   :  { %1986 = vrcp.f32 %v595_v56 }
 0x4ac   :  { %v1985_v57 = vpop.eup %1984 }
 0x4ad   :  { %v622_v12 = vsub.f32 1.0, %v1985_v57  ;;  %v634_v17 = vmul.f32 %v1985_v57, %v2328_v27 }
 0x4ae   :  { %v1987_v60 = vpop.eup %1986 }
 0x4af   :  { %v623_v15 = vsub.f32 1.0, %v1987_v60  ;;  %v635_v18 = vmul.f32 %v1987_v60, %v2330_v28 }
 0x4f5   :  { %v603_v58 = vpop.permute.xlu1 %602 }
 0x4f6   :  { %v608_v59 = vmul.f32 %v1985_v57, %v603_v58 }
 0x4f7   :  { %v605_v61 = vpop.permute.xlu0 %604 }
 0x4f8   :  { %v609_v62 = vmul.f32 %v1987_v60, %v605_v61  ;;  %612 = vrot.lane.b32.xlu1 %v608_v59, %s2137_s2 }
 0x4fa   :  { %614 = vrot.lane.b32.xlu0 %v609_v62, %s2137_s2 }
 0x56a   :  { %v613_v63 = vpop.permute.xlu1 %612 }
 0x56b   :  { %v618_v0 = vadd.f32 %v613_v63, %v540_v47 }
 0x56c   :  { %v615_v1 = vpop.permute.xlu0 %614 }
 0x56d   :  { %1988 = vtanh.f32 %v618_v0  ;;  %v619_v3 = vadd.f32 %v615_v1, %v541_v48  ;;  %v151_v0 = vsub.s32 3, %v2218_v6 }
 0x56f   :  { %1990 = vtanh.f32 %v619_v3 }
 0x577   :  { %v1989_v5 = vpop.eup %1988 }
 0x578   :  { %626 = vrot.lane.b32.xlu1 %v1989_v5, %s2138_s8  ;;  %v152_v5 = vrot.slane %v2228_v8, %v151_v0 }
 0x579   :  { %v1991_v7 = vpop.eup %1990 }
 0x57a   :  { %628 = vrot.lane.b32.xlu0 %v1991_v7, %s2138_s8 }
 0x57e   :  { %143 = vbcast.lane.b32.xlu0 %v141_v9, 256 }
 0x5ea   :  { %v627_v13 = vpop.permute.xlu1 %626 }
 0x5eb   :  { %v632_v14 = vmul.f32 %v627_v13, %v622_v12 }
 0x5ec   :  { %v629_v16 = vpop.permute.xlu0 %628 }
 0x5ed   :  { %v633_v22 = vmul.f32 %v629_v16, %v623_v15  ;;  %v2366_v23 = vadd.f32 %v634_v17, %v632_v14 }
 0x5ef   :  { %v2368_v25 = vadd.f32 %v635_v18, %v633_v22 }
 0x5f0   :  { %v144_v30 = vpop.permute.xlu0 %143 }
 0x5f1   :  { %v638_v26 = vpack.c.bf16 %v2368_v25, %v2366_v23  ;;  %vm197_vm9 = vcmp.eq.s32.totalorder %v144_v30, %v2281_v21 }
 0x5f3   :  { %640 = vrot.lane.b32.xlu1 %v638_v26, %s2138_s8 }
 0x5f7   :  { %147 = vbcast.lane.b32.xlu1 %v141_v9, 264 }
 0x665   :  { %v641_v29 = vpop.permute.xlu1 %640 }
 0x666   :  { %644 = vst.msk [vmem:[#allocation3 + $0x8] sm:$0xff] %vm66_vm1, %v641_v29  ;;  %1870 = vmatmul.mubr.msk.bf16.vlgmr.msra.gmra.mrb[12].mxu0 %vm66_vm1, %v641_v29 }
 0x667   :  { %1874 = vmatpush3.bf16.msra.mxu0 %v2269_v19  ;;  %1877 = vmatprep.mubr.msk.bf16.mxu0 %vm2135_vm0, %v2134_v2 }
 0x668   :  { %1875 = vmatprep.subr.bf16.mxu0 %v2134_v2 }
 0x669   :  { %v148_v27 = vpop.permute.xlu1 %147 }
 0x66a   :  { %vm198_vm10 = vcmp.eq.s32.totalorder %v148_v27, %v2281_v21 }
 0x66b   :  { %vm1705_vm11 = vmpackc.low %vm198_vm10, %vm197_vm9  ;;  %1876 = vmatpush3.bf16.msra.mxu0 %v2275_v20 }
 0x66c   :  { %1830 = vmatmul.mubr.msk.bf16.gmra.mrb[8].mxu1 %vm1705_vm11, %v2136_v24  ;;  %1881 = vmatprep.subr.bf16.mxu0 %v2134_v2 }
 0x66d   :  { %1833 = vmatprep.mubr.msk.bf16.mxu1 %vm2135_vm0, %v2134_v2 }
 0x739   :  { %v685_v28 = vpop.f32.mrb[12].mxu0 }
 0x73a   :  { %v686_v31 = vadd.f32 %v2313_v42, %v685_v28  ;;  %v1871_v32 = vpop.f32.mrb[13].mxu0 }
 0x73b   :  { %v688_v33 = vpop.f32.mrb[14].mxu0 }
 0x73c   :  { %v689_v34 = vadd.f32 %v2313_v42, %v688_v33  ;;  %708 = vrot.lane.b32.xlu0 %v686_v31, %s2137_s2  ;;  %v1872_v36 = vpop.f32.mrb[15].mxu0 }
 0x73e   :  { %710 = vrot.lane.b32.xlu1 %v689_v34, %s2137_s2 }
 0x73f   :  { %v349_v37 = vpop.f32.mrb[8].mxu1 }
 0x740   :  { %v350_v38 = vadd.f32 %v2304_v35, %v349_v37  ;;  %v1831_v39 = vpop.f32.mrb[9].mxu1 }
 0x741   :  { %v352_v40 = vpop.f32.mrb[10].mxu1 }
 0x742   :  { %393 = vst.msk [vmem:[#allocation2 + $0x20] sm:$0xff] %vm388_vm5, %v350_v38  ;;  %v353_v41 = vadd.f32 %v2304_v35, %v352_v40  ;;  %v1832_v43 = vpop.f32.mrb[11].mxu1 }
 0x744   :  { %394 = vst.msk [vmem:[#allocation2 + $0x28] sm:$0xff] %vm388_vm5, %v353_v41 }
 0x749   :  { %v646_v44 = vld [vmem:[#allocation2 + $0x20] sm:$0xff] }
 0x74a   :  { %v692_v46 = vadd.f32 %v686_v31, %v646_v44 }
 0x74b   :  { %v647_v45 = vld [vmem:[#allocation2 + $0x28] sm:$0xff] }
 0x74c   :  { %v693_v47 = vadd.f32 %v689_v34, %v647_v45  ;;  %v1725_v48 = vmul.f32 -1.442695, %v692_v46 }
 0x74e   :  { %v1726_v49 = vmul.f32 -1.442695, %v693_v47  ;;  %1992 = vpow2.f32 %v1725_v48 }
 0x750   :  { %1994 = vpow2.f32 %v1726_v49 }
 0x758   :  { %v1993_v50 = vpop.eup %1992 }
 0x759   :  { %v700_v52 = vadd.f32 1.0, %v1993_v50 }
 0x75a   :  { %v1995_v51 = vpop.eup %1994 }
 0x75b   :  { %v701_v53 = vadd.f32 1.0, %v1995_v51  ;;  %1996 = vrcp.f32 %v700_v52 }
 0x75d   :  { %1998 = vrcp.f32 %v701_v53 }
 0x765   :  { %v1997_v54 = vpop.eup %1996 }
 0x766   :  { %v728_v7 = vsub.f32 1.0, %v1997_v54  ;;  %v740_v15 = vmul.f32 %v1997_v54, %v2366_v23 }
 0x767   :  { %v1999_v57 = vpop.eup %1998 }
 0x768   :  { %v729_v13 = vsub.f32 1.0, %v1999_v57  ;;  %v741_v16 = vmul.f32 %v1999_v57, %v2368_v25 }
 0x7ae   :  { %v709_v55 = vpop.permute.xlu0 %708 }
 0x7af   :  { %v714_v56 = vmul.f32 %v1997_v54, %v709_v55 }
 0x7b0   :  { %v711_v58 = vpop.permute.xlu1 %710 }
 0x7b1   :  { %v715_v59 = vmul.f32 %v1999_v57, %v711_v58  ;;  %718 = vrot.lane.b32.xlu0 %v714_v56, %s2137_s2 }
 0x7b3   :  { %720 = vrot.lane.b32.xlu1 %v715_v59, %s2137_s2 }
 0x823   :  { %v719_v60 = vpop.permute.xlu0 %718 }
 0x824   :  { %v724_v61 = vadd.f32 %v719_v60, %v646_v44 }
 0x825   :  { %v721_v62 = vpop.permute.xlu1 %720 }
 0x826   :  { %2000 = vtanh.f32 %v724_v61  ;;  %v725_v63 = vadd.f32 %v721_v62, %v647_v45  ;;  %v162_v62 = vsub.s32 4, %v2218_v6 }
 0x828   :  { %2002 = vtanh.f32 %v725_v63 }
 0x830   :  { %v2001_v1 = vpop.eup %2000 }
 0x831   :  { %732 = vrot.lane.b32.xlu0 %v2001_v1, %s2138_s8 }
 0x832   :  { %v2003_v3 = vpop.eup %2002 }
 0x833   :  { %734 = vrot.lane.b32.xlu1 %v2003_v3, %s2138_s8  ;;  %v163_v3 = vrot.slane %v2228_v8, %v162_v62 }
 0x837   :  { %154 = vbcast.lane.b32.xlu1 %v152_v5, 256 }
 0x8a3   :  { %v733_v9 = vpop.permute.xlu0 %732 }
 0x8a4   :  { %v738_v12 = vmul.f32 %v733_v9, %v728_v7 }
 0x8a5   :  { %v735_v14 = vpop.permute.xlu1 %734 }
 0x8a6   :  { %v739_v17 = vmul.f32 %v735_v14, %v729_v13  ;;  %v2404_v18 = vadd.f32 %v740_v15, %v738_v12 }
 0x8a8   :  { %v2406_v22 = vadd.f32 %v741_v16, %v739_v17 }
 0x8a9   :  { %v155_v30 = vpop.permute.xlu1 %154 }
 0x8aa   :  { %v744_v26 = vpack.c.bf16 %v2406_v22, %v2404_v18  ;;  %vm199_vm12 = vcmp.eq.s32.totalorder %v155_v30, %v2281_v21 }
 0x8ac   :  { %746 = vrot.lane.b32.xlu0 %v744_v26, %s2138_s8 }
 0x8b0   :  { %158 = vbcast.lane.b32.xlu0 %v152_v5, 264 }
 0x91e   :  { %v747_v29 = vpop.permute.xlu0 %746 }
 0x91f   :  { %750 = vst.msk [vmem:[#allocation3 + $0x10] sm:$0xff] %vm66_vm1, %v747_v29  ;;  %1878 = vmatmul.mubr.msk.bf16.vlgmr.msra.gmra.mrb[16].mxu0 %vm66_vm1, %v747_v29 }
 0x920   :  { %1882 = vmatpush3.bf16.msra.mxu0 %v2269_v19  ;;  %1885 = vmatprep.mubr.msk.bf16.mxu0 %vm2135_vm0, %v2134_v2 }
 0x921   :  { %1883 = vmatprep.subr.bf16.mxu0 %v2134_v2 }
 0x922   :  { %v159_v23 = vpop.permute.xlu0 %158 }
 0x923   :  { %vm200_vm13 = vcmp.eq.s32.totalorder %v159_v23, %v2281_v21 }
 0x924   :  { %vm1707_vm14 = vmpackc.low %vm200_vm13, %vm199_vm12  ;;  %1884 = vmatpush3.bf16.msra.mxu0 %v2275_v20 }
 0x925   :  { %1834 = vmatmul.mubr.msk.bf16.gmra.mrb[12].mxu1 %vm1707_vm14, %v2136_v24  ;;  %1889 = vmatprep.subr.bf16.mxu0 %v2134_v2 }
 0x926   :  { %1837 = vmatprep.mubr.msk.bf16.mxu1 %vm2135_vm0, %v2134_v2 }
 0x9f2   :  { %v791_v25 = vpop.f32.mrb[16].mxu0 }
 0x9f3   :  { %v792_v27 = vadd.f32 %v2313_v42, %v791_v25  ;;  %v1879_v28 = vpop.f32.mrb[17].mxu0 }
 0x9f4   :  { %v794_v31 = vpop.f32.mrb[18].mxu0 }
 0x9f5   :  { %v795_v32 = vadd.f32 %v2313_v42, %v794_v31  ;;  %814 = vrot.lane.b32.xlu1 %v792_v27, %s2137_s2  ;;  %v1880_v33 = vpop.f32.mrb[19].mxu0 }
 0x9f7   :  { %816 = vrot.lane.b32.xlu0 %v795_v32, %s2137_s2 }
 0x9f8   :  { %v357_v34 = vpop.f32.mrb[12].mxu1 }
 0x9f9   :  { %v358_v36 = vadd.f32 %v2304_v35, %v357_v34  ;;  %v1835_v37 = vpop.f32.mrb[13].mxu1 }
 0x9fa   :  { %v360_v38 = vpop.f32.mrb[14].mxu1 }
 0x9fb   :  { %395 = vst.msk [vmem:[#allocation2 + $0x30] sm:$0xff] %vm388_vm5, %v358_v36  ;;  %v361_v39 = vadd.f32 %v2304_v35, %v360_v38  ;;  %v1836_v40 = vpop.f32.mrb[15].mxu1 }
 0x9fd   :  { %396 = vst.msk [vmem:[#allocation2 + $0x38] sm:$0xff] %vm388_vm5, %v361_v39 }
 0xa02   :  { %v752_v41 = vld [vmem:[#allocation2 + $0x30] sm:$0xff] }
 0xa03   :  { %v798_v44 = vadd.f32 %v792_v27, %v752_v41 }
 0xa04   :  { %v753_v43 = vld [vmem:[#allocation2 + $0x38] sm:$0xff] }
 0xa05   :  { %v799_v45 = vadd.f32 %v795_v32, %v753_v43  ;;  %v1728_v46 = vmul.f32 -1.442695, %v798_v44 }
 0xa07   :  { %v1729_v47 = vmul.f32 -1.442695, %v799_v45  ;;  %2004 = vpow2.f32 %v1728_v46 }
 0xa09   :  { %2006 = vpow2.f32 %v1729_v47 }
 0xa11   :  { %v2005_v48 = vpop.eup %2004 }
 0xa12   :  { %v806_v50 = vadd.f32 1.0, %v2005_v48 }
 0xa13   :  { %v2007_v49 = vpop.eup %2006 }
 0xa14   :  { %v807_v51 = vadd.f32 1.0, %v2007_v49  ;;  %2008 = vrcp.f32 %v806_v50 }
 0xa16   :  { %2010 = vrcp.f32 %v807_v51 }
 0xa1e   :  { %v2009_v52 = vpop.eup %2008 }
 0xa1f   :  { %v834_v5 = vsub.f32 1.0, %v2009_v52  ;;  %v846_v14 = vmul.f32 %v2009_v52, %v2404_v18 }
 0xa20   :  { %v2011_v55 = vpop.eup %2010 }
 0xa21   :  { %v835_v12 = vsub.f32 1.0, %v2011_v55  ;;  %v847_v15 = vmul.f32 %v2011_v55, %v2406_v22 }
 0xa67   :  { %v815_v53 = vpop.permute.xlu1 %814 }
 0xa68   :  { %v820_v54 = vmul.f32 %v2009_v52, %v815_v53 }
 0xa69   :  { %v817_v56 = vpop.permute.xlu0 %816 }
 0xa6a   :  { %v821_v57 = vmul.f32 %v2011_v55, %v817_v56  ;;  %824 = vrot.lane.b32.xlu1 %v820_v54, %s2137_s2 }
 0xa6c   :  { %826 = vrot.lane.b32.xlu0 %v821_v57, %s2137_s2 }
 0xadc   :  { %v825_v58 = vpop.permute.xlu1 %824 }
 0xadd   :  { %v830_v59 = vadd.f32 %v825_v58, %v752_v41 }
 0xade   :  { %v827_v60 = vpop.permute.xlu0 %826 }
 0xadf   :  { %2012 = vtanh.f32 %v830_v59  ;;  %v831_v61 = vadd.f32 %v827_v60, %v753_v43 }
 0xae1   :  { %2014 = vtanh.f32 %v831_v61  ;;  %v173_v61 = vsub.s32 5, %v2218_v6 }
 0xae9   :  { %v2013_v63 = vpop.eup %2012 }
 0xaea   :  { %838 = vrot.lane.b32.xlu1 %v2013_v63, %s2138_s8 }
 0xaeb   :  { %v2015_v1 = vpop.eup %2014 }
 0xaec   :  { %840 = vrot.lane.b32.xlu0 %v2015_v1, %s2138_s8 }
 0xaf0   :  { %165 = vbcast.lane.b32.xlu0 %v163_v3, 256 }
 0xb5c   :  { %v839_v7 = vpop.permute.xlu1 %838 }
 0xb5d   :  { %v844_v9 = vmul.f32 %v839_v7, %v834_v5 }
 0xb5e   :  { %v841_v13 = vpop.permute.xlu0 %840 }
 0xb5f   :  { %v845_v16 = vmul.f32 %v841_v13, %v835_v12  ;;  %v2442_v17 = vadd.f32 %v846_v14, %v844_v9 }
 0xb61   :  { %v2444_v26 = vadd.f32 %v847_v15, %v845_v16 }
 0xb62   :  { %v166_v23 = vpop.permute.xlu0 %165 }
 0xb63   :  { %v850_v29 = vpack.c.bf16 %v2444_v26, %v2442_v17  ;;  %vm201_vm15 = vcmp.eq.s32.totalorder %v166_v23, %v2281_v21 }
 0xb65   :  { %852 = vrot.lane.b32.xlu1 %v850_v29, %s2138_s8 }
 0xb69   :  { %169 = vbcast.lane.b32.xlu1 %v163_v3, 264  ;;  %v174_v3 = vrot.slane %v2228_v8, %v173_v61 }
 0xbd7   :  { %v853_v30 = vpop.permute.xlu1 %852 }
 0xbd8   :  { %856 = vst.msk [vmem:[#allocation3 + $0x18] sm:$0xff] %vm66_vm1, %v853_v30  ;;  %1886 = vmatmul.mubr.msk.bf16.vlgmr.msra.gmra.mrb[20].mxu0 %vm66_vm1, %v853_v30 }
 0xbd9   :  { %1890 = vmatpush3.bf16.msra.mxu0 %v2269_v19  ;;  %1893 = vmatprep.mubr.msk.bf16.mxu0 %vm2135_vm0, %v2134_v2 }
 0xbda   :  { %1891 = vmatprep.subr.bf16.mxu0 %v2134_v2 }
 0xbdb   :  { %v170_v18 = vpop.permute.xlu1 %169 }
 0xbdc   :  { %vm202_vm2 = vcmp.eq.s32.totalorder %v170_v18, %v2281_v21 }
 0xbdd   :  { %vm1709_vm3 = vmpackc.low %vm202_vm2, %vm201_vm15  ;;  %1892 = vmatpush3.bf16.msra.mxu0 %v2275_v20 }
 0xbde   :  { %1838 = vmatmul.mubr.msk.bf16.gmra.mrb[16].mxu1 %vm1709_vm3, %v2136_v24  ;;  %1897 = vmatprep.subr.bf16.mxu0 %v2134_v2 }
 0xbdf   :  { %1841 = vmatprep.mubr.msk.bf16.mxu1 %vm2135_vm0, %v2134_v2 }
 0xcab   :  { %v897_v22 = vpop.f32.mrb[20].mxu0 }
 0xcac   :  { %v898_v25 = vadd.f32 %v2313_v42, %v897_v22  ;;  %v1887_v27 = vpop.f32.mrb[21].mxu0 }
 0xcad   :  { %v900_v28 = vpop.f32.mrb[22].mxu0 }
 0xcae   :  { %v901_v31 = vadd.f32 %v2313_v42, %v900_v28  ;;  %920 = vrot.lane.b32.xlu0 %v898_v25, %s2137_s2  ;;  %v1888_v32 = vpop.f32.mrb[23].mxu0 }
 0xcb0   :  { %922 = vrot.lane.b32.xlu1 %v901_v31, %s2137_s2 }
 0xcb1   :  { %v365_v33 = vpop.f32.mrb[16].mxu1 }
 0xcb2   :  { %v366_v34 = vadd.f32 %v2304_v35, %v365_v33  ;;  %v1839_v36 = vpop.f32.mrb[17].mxu1 }
 0xcb3   :  { %v368_v37 = vpop.f32.mrb[18].mxu1 }
 0xcb4   :  { %397 = vst.msk [vmem:[#allocation2 + $0x40] sm:$0xff] %vm388_vm5, %v366_v34  ;;  %v369_v38 = vadd.f32 %v2304_v35, %v368_v37  ;;  %v1840_v39 = vpop.f32.mrb[19].mxu1 }
 0xcb6   :  { %398 = vst.msk [vmem:[#allocation2 + $0x48] sm:$0xff] %vm388_vm5, %v369_v38 }
 0xcbb   :  { %v858_v40 = vld [vmem:[#allocation2 + $0x40] sm:$0xff] }
 0xcbc   :  { %v904_v43 = vadd.f32 %v898_v25, %v858_v40 }
 0xcbd   :  { %v859_v41 = vld [vmem:[#allocation2 + $0x48] sm:$0xff] }
 0xcbe   :  { %v905_v44 = vadd.f32 %v901_v31, %v859_v41  ;;  %v1731_v45 = vmul.f32 -1.442695, %v904_v43 }
 0xcc0   :  { %v1732_v46 = vmul.f32 -1.442695, %v905_v44  ;;  %2016 = vpow2.f32 %v1731_v45 }
 0xcc2   :  { %2018 = vpow2.f32 %v1732_v46 }
 0xcca   :  { %v2017_v47 = vpop.eup %2016 }
 0xccb   :  { %v912_v49 = vadd.f32 1.0, %v2017_v47 }
 0xccc   :  { %v2019_v48 = vpop.eup %2018 }
 0xccd   :  { %v913_v50 = vadd.f32 1.0, %v2019_v48  ;;  %2020 = vrcp.f32 %v912_v49 }
 0xccf   :  { %2022 = vrcp.f32 %v913_v50 }
 0xcd7   :  { %v2021_v51 = vpop.eup %2020 }
 0xcd8   :  { %v940_v5 = vsub.f32 1.0, %v2021_v51  ;;  %v952_v14 = vmul.f32 %v2021_v51, %v2442_v17 }
 0xcd9   :  { %v2023_v54 = vpop.eup %2022 }
 0xcda   :  { %v941_v12 = vsub.f32 1.0, %v2023_v54  ;;  %v953_v15 = vmul.f32 %v2023_v54, %v2444_v26 }
 0xd20   :  { %v921_v52 = vpop.permute.xlu0 %920 }
 0xd21   :  { %v926_v53 = vmul.f32 %v2021_v51, %v921_v52 }
 0xd22   :  { %v923_v55 = vpop.permute.xlu1 %922 }
 0xd23   :  { %v927_v56 = vmul.f32 %v2023_v54, %v923_v55  ;;  %930 = vrot.lane.b32.xlu0 %v926_v53, %s2137_s2 }
 0xd25   :  { %932 = vrot.lane.b32.xlu1 %v927_v56, %s2137_s2 }
 0xd95   :  { %v931_v57 = vpop.permute.xlu0 %930 }
 0xd96   :  { %v936_v58 = vadd.f32 %v931_v57, %v858_v40  ;;  %v184_v57 = vsub.s32 6, %v2218_v6 }
 0xd97   :  { %v933_v59 = vpop.permute.xlu1 %932 }
 0xd98   :  { %2024 = vtanh.f32 %v936_v58  ;;  %v937_v60 = vadd.f32 %v933_v59, %v859_v41 }
 0xd9a   :  { %2026 = vtanh.f32 %v937_v60  ;;  %v2108_v60 = vld [vmem:[%s2823_s0] sm:$0x7f] }
 0xda2   :  { %v2025_v63 = vpop.eup %2024 }
 0xda3   :  { %944 = vrot.lane.b32.xlu0 %v2025_v63, %s2138_s8  ;;  %v185_v63 = vrot.slane %v2108_v60, %v184_v57 }
 0xda4   :  { %v2027_v1 = vpop.eup %2026 }
 0xda5   :  { %946 = vrot.lane.b32.xlu1 %v2027_v1, %s2138_s8  ;;  %v1962_v1 = vld [vmem:[%s2832_s9] sm:$0xff]  }
 0xda6   :  { %1939 = vmatpush3.bf16.msra.mxu1 %v1962_v1 }
 0xda7   :  { %1938 = vmatprep.subr.bf16.mxu1 %v2134_v2 }
 0xda9   :  { %176 = vbcast.lane.b32.xlu1 %v174_v3, 256 }
 0xe15   :  { %v945_v7 = vpop.permute.xlu0 %944 }
 0xe16   :  { %v950_v9 = vmul.f32 %v945_v7, %v940_v5  ;;  %v1963_v5 = vld [vmem:[%s2832_s9 + $0x8] sm:$0xff]  }
 0xe17   :  { %v947_v13 = vpop.permute.xlu1 %946  ;;  %1940 = vmatpush3.bf16.msra.mxu1 %v1963_v5 }
 0xe18   :  { %v951_v16 = vmul.f32 %v947_v13, %v941_v12  ;;  %v2480_v29 = vadd.f32 %v952_v14, %v950_v9 }
 0xe1a   :  { %v2482_v30 = vadd.f32 %v953_v15, %v951_v16 }
 0xe1b   :  { %v177_v18 = vpop.permute.xlu1 %176 }
 0xe1c   :  { %v956_v23 = vpack.c.bf16 %v2482_v30, %v2480_v29  ;;  %vm203_vm4 = vcmp.eq.s32.totalorder %v177_v18, %v2281_v21 }
 0xe1e   :  { %958 = vrot.lane.b32.xlu0 %v956_v23, %s2138_s8 }
 0xe22   :  { %180 = vbcast.lane.b32.xlu0 %v174_v3, 264 }
 0xe90   :  { %v959_v8 = vpop.permute.xlu0 %958 }
 0xe91   :  { %962 = vst.msk [vmem:[#allocation3 + $0x20] sm:$0xff] %vm66_vm1, %v959_v8  ;;  %1894 = vmatmul.mubr.msk.bf16.vlgmr.msra.gmra.mrb[24].mxu0 %vm66_vm1, %v959_v8 }
 0xe92   :  { %1898 = vmatpush3.bf16.msra.mxu0 %v2269_v19  ;;  %1901 = vmatprep.mubr.msk.bf16.mxu0 %vm2135_vm0, %v2134_v2 }
 0xe93   :  { %1899 = vmatprep.subr.bf16.mxu0 %v2134_v2 }
 0xe94   :  { %v181_v17 = vpop.permute.xlu0 %180 }
 0xe95   :  { %vm204_vm6 = vcmp.eq.s32.totalorder %v181_v17, %v2281_v21 }
 0xe96   :  { %vm1711_vm7 = vmpackc.low %vm204_vm6, %vm203_vm4  ;;  %1900 = vmatpush3.bf16.msra.mxu0 %v2275_v20 }
 0xe97   :  { %1842 = vmatmul.mubr.msk.bf16.gmra.mrb[20].mxu1 %vm1711_vm7, %v2136_v24  ;;  %1905 = vmatprep.subr.bf16.mxu0 %v2134_v2 }
 0xe98   :  { %1845 = vmatprep.mubr.msk.bf16.mxu1 %vm2135_vm0, %v2134_v2 }
 0xf64   :  { %v1003_v19 = vpop.f32.mrb[24].mxu0 }
 0xf65   :  { %v1004_v26 = vadd.f32 %v2313_v42, %v1003_v19  ;;  %v1895_v22 = vpop.f32.mrb[25].mxu0 }
 0xf66   :  { %v1006_v25 = vpop.f32.mrb[26].mxu0  ;;  %v1176_v22 = vld [vmem:[#allocation3 + $0x8] sm:$0xff] }
 0xf67   :  { %v1007_v27 = vadd.f32 %v2313_v42, %v1006_v25  ;;  %1026 = vrot.lane.b32.xlu1 %v1004_v26, %s2137_s2  ;;  %v1896_v28 = vpop.f32.mrb[27].mxu0  ;;  %v1178_v25 = vld [vmem:[#allocation3 + $0x18] sm:$0xff] }
 0xf69   :  { %1028 = vrot.lane.b32.xlu0 %v1007_v27, %s2137_s2 }
 0xf6a   :  { %v373_v20 = vpop.f32.mrb[20].mxu1 }
 0xf6b   :  { %v374_v31 = vadd.f32 %v2304_v35, %v373_v20  ;;  %v1843_v32 = vpop.f32.mrb[21].mxu1 }
 0xf6c   :  { %v376_v33 = vpop.f32.mrb[22].mxu1 }
 0xf6d   :  { %399 = vst.msk [vmem:[#allocation2 + $0x50] sm:$0xff] %vm388_vm5, %v374_v31  ;;  %v377_v34 = vadd.f32 %v2304_v35, %v376_v33  ;;  %v1844_v36 = vpop.f32.mrb[23].mxu1 }
 0xf6f   :  { %400 = vst.msk [vmem:[#allocation2 + $0x58] sm:$0xff] %vm388_vm5, %v377_v34 }
 0xf74   :  { %v964_v37 = vld [vmem:[#allocation2 + $0x50] sm:$0xff] }
 0xf75   :  { %v1010_v39 = vadd.f32 %v1004_v26, %v964_v37 }
 0xf76   :  { %v965_v38 = vld [vmem:[#allocation2 + $0x58] sm:$0xff] }
 0xf77   :  { %v1011_v40 = vadd.f32 %v1007_v27, %v965_v38  ;;  %v1734_v41 = vmul.f32 -1.442695, %v1010_v39  ;;  %v1179_v27 = vld [vmem:[#allocation3 + $0x20] sm:$0xff] }
 0xf79   :  { %v1735_v43 = vmul.f32 -1.442695, %v1011_v40  ;;  %2028 = vpow2.f32 %v1734_v41 }
 0xf7b   :  { %2030 = vpow2.f32 %v1735_v43 }
 0xf83   :  { %v2029_v44 = vpop.eup %2028 }
 0xf84   :  { %v1018_v46 = vadd.f32 1.0, %v2029_v44 }
 0xf85   :  { %v2031_v45 = vpop.eup %2030 }
 0xf86   :  { %v1019_v47 = vadd.f32 1.0, %v2031_v45  ;;  %2032 = vrcp.f32 %v1018_v46 }
 0xf88   :  { %2034 = vrcp.f32 %v1019_v47 }
 0xf90   :  { %v2033_v48 = vpop.eup %2032 }
 0xf91   :  { %v1046_v3 = vsub.f32 1.0, %v2033_v48  ;;  %v1058_v14 = vmul.f32 %v2033_v48, %v2480_v29 }
 0xf92   :  { %v2035_v50 = vpop.eup %2034 }
 0xf93   :  { %v1047_v12 = vsub.f32 1.0, %v2035_v50  ;;  %v1059_v15 = vmul.f32 %v2035_v50, %v2482_v30  ;;  %v1175_v30 = vld [vmem:[#allocation3] sm:$0xff] }
 0xfd9   :  { %v1027_v49 = vpop.permute.xlu1 %1026 }
 0xfda   :  { %v1032_v35 = vmul.f32 %v2033_v48, %v1027_v49 }
 0xfdb   :  { %v1029_v51 = vpop.permute.xlu0 %1028 }
 0xfdc   :  { %v1033_v52 = vmul.f32 %v2035_v50, %v1029_v51  ;;  %1036 = vrot.lane.b32.xlu1 %v1032_v35, %s2137_s2 }
 0xfde   :  { %1038 = vrot.lane.b32.xlu0 %v1033_v52, %s2137_s2 }
0x104e   :  { %v1037_v53 = vpop.permute.xlu1 %1036 }
0x104f   :  { %v1042_v54 = vadd.f32 %v1037_v53, %v964_v37  ;;  %v2109_v37 = vld [vmem:[%s2829_s6] ss:$0 sm:$0xff] }
0x1050   :  { %v1039_v55 = vpop.permute.xlu0 %1038 }
0x1051   :  { %2036 = vtanh.f32 %v1042_v54  ;;  %v1043_v56 = vadd.f32 %v1039_v55, %v965_v38 }
0x1053   :  { %2038 = vtanh.f32 %v1043_v56 }
0x105b   :  { %v2037_v58 = vpop.eup %2036 }
0x105c   :  { %1050 = vrot.lane.b32.xlu1 %v2037_v58, %s2138_s8 }
0x105d   :  { %v2039_v59 = vpop.eup %2038 }
0x105e   :  { %1052 = vrot.lane.b32.xlu0 %v2039_v59, %s2138_s8 }
0x1062   :  { %187 = vbcast.lane.b32.xlu0 %v185_v63, 256 }
0x10ce   :  { %v1051_v7 = vpop.permute.xlu1 %1050 }
0x10cf   :  { %v1056_v9 = vmul.f32 %v1051_v7, %v1046_v3 }
0x10d0   :  { %v1053_v13 = vpop.permute.xlu0 %1052 }
0x10d1   :  { %v1057_v16 = vmul.f32 %v1053_v13, %v1047_v12  ;;  %v2527_v23 = vadd.f32 %v1058_v14, %v1056_v9 }
0x10d3   :  { %v2529_v8 = vadd.f32 %v1059_v15, %v1057_v16 }
0x10d4   :  { %v188_v19 = vpop.permute.xlu0 %187 }
0x10d5   :  { %v1062_v18 = vpack.c.bf16 %v2529_v8, %v2527_v23  ;;  %vm205_vm8 = vcmp.eq.s32.totalorder %v188_v19, %v2281_v21 }
0x10d7   :  { %1064 = vrot.lane.b32.xlu1 %v1062_v18, %s2138_s8 }
0x10db   :  { %191 = vbcast.lane.b32.xlu1 %v185_v63, 264 }
0x1149   :  { %v1065_v17 = vpop.permute.xlu1 %1064 }
0x114a   :  { %1068 = vst.msk [vmem:[#allocation3 + $0x28] sm:$0xff] %vm66_vm1, %v1065_v17  ;;  %1902 = vmatmul.mubr.msk.bf16.vlgmr.msra.gmra.mrb[28].mxu0 %vm66_vm1, %v1065_v17 }
0x114b   :  { %1906 = vmatpush3.bf16.msra.mxu0 %v1962_v1  ;;  %1909 = vmatprep.mubr.msk.bf16.mxu0 %vm2135_vm0, %v2134_v2 }
0x114c   :  { %1907 = vmatprep.subr.bf16.mxu0 %v2134_v2 }
0x114d   :  { %v192_v29 = vpop.permute.xlu1 %191 }
0x114e   :  { %vm206_vm9 = vcmp.eq.s32.totalorder %v192_v29, %v2281_v21 }
0x114f   :  { %vm1713_vm10 = vmpackc.low %vm206_vm9, %vm205_vm8  ;;  %1908 = vmatpush3.bf16.msra.mxu0 %v1963_v5 }
0x1150   :  { %1846 = vmatmul.mubr.msk.bf16.gmra.mrb[24].mxu1 %vm1713_vm10, %v2136_v24  ;;  %v1177_v24 = vld [vmem:[#allocation3 + $0x10] sm:$0xff] }
0x1151   :  { %1929 = vmatprep.mubr.msk.bf16.mxu1 %vm2135_vm0, %v2134_v2  ;;  %v1180_v26 = vld [vmem:[#allocation3 + $0x28] sm:$0xff] }
0x1152   :  { %1910 = vmatmul.mubr.msk.bf16.vlgmr.msra.gmra.mrb[32].mxu0 %vm66_vm1, %v1175_v30 }
0x1153   :  { %1913 = vmatprep.mubr.msk.bf16.mxu0 %vm2135_vm0, %v2134_v2 }
0x1158   :  { %1930 = vmatmul.mubr.msk.bf16.vlgmr.msra.gmra.mrb[28].mxu1 %vm66_vm1, %v1180_v26 }
0x1159   :  { %1933 = vmatprep.mubr.msk.bf16.mxu1 %vm2135_vm0, %v2134_v2 }
0x115a   :  { %1914 = vmatmul.mubr.msk.bf16.gmra.mrb[36].mxu0 %vm66_vm1, %v1176_v22 }
0x115b   :  { %1917 = vmatprep.mubr.msk.bf16.mxu0 %vm2135_vm0, %v2134_v2 }
0x1162   :  { %1918 = vmatmul.mubr.msk.bf16.gmra.mrb[40].mxu0 %vm66_vm1, %v1177_v24 }
0x1163   :  { %1921 = vmatprep.mubr.msk.bf16.mxu0 %vm2135_vm0, %v2134_v2 }
0x116a   :  { %1922 = vmatmul.mubr.msk.bf16.gmra.mrb[44].mxu0 %vm66_vm1, %v1178_v25 }
0x116b   :  { %1925 = vmatprep.mubr.msk.bf16.mxu0 %vm2135_vm0, %v2134_v2 }
0x1172   :  { %1926 = vmatmul.mubr.msk.bf16.gmra.mrb[48].mxu0 %vm66_vm1, %v1179_v27 }
0x121d   :  { %v1109_v28 = vpop.f32.mrb[28].mxu0 }
0x121e   :  { %v1110_v20 = vadd.f32 %v2313_v42, %v1109_v28  ;;  %v1903_v31 = vpop.f32.mrb[29].mxu0 }
0x121f   :  { %v1112_v32 = vpop.f32.mrb[30].mxu0 }
0x1220   :  { %v1113_v33 = vadd.f32 %v2313_v42, %v1112_v32  ;;  %1132 = vrot.lane.b32.xlu0 %v1110_v20, %s2137_s2  ;;  %v1904_v34 = vpop.f32.mrb[31].mxu0 }
0x1222   :  { %1134 = vrot.lane.b32.xlu1 %v1113_v33, %s2137_s2 }
0x1223   :  { %v381_v36 = vpop.f32.mrb[24].mxu1 }
0x1224   :  { %v382_v38 = vadd.f32 %v2109_v37, %v381_v36  ;;  %v1847_v39 = vpop.f32.mrb[25].mxu1 }
0x1225   :  { %v384_v40 = vpop.f32.mrb[26].mxu1  ;;  %v1260_v41 = vpop.f32.mrb[32].mxu0 }
0x1226   :  { %401 = vst.msk [vmem:[#allocation2 + $0x60] sm:$0xff] %vm388_vm5, %v382_v38  ;;  %v385_v43 = vadd.f32 %v2109_v37, %v384_v40  ;;  %v1911_v44 = vpop.f32.mrb[33].mxu0  ;;  %v1848_v45 = vpop.f32.mrb[27].mxu1  ;;  %v2588_v37 = vld [vmem:[%s2833_s10] ss:$0 sm:$0xff] }
0x1227   :  { %v2568_v42 = vpop.f32.mrb[34].mxu0  ;;  %v2591_v38 = vadd.f32 %v2588_v37, %v1260_v41 }
0x1228   :  { %402 = vst.msk [vmem:[#allocation2 + $0x68] sm:$0xff] %vm388_vm5, %v385_v43  ;;  %v1912_v46 = vpop.f32.mrb[35].mxu0 }
0x122b   :  { %v2571_v47 = vpop.f32.mrb[28].mxu1 }
0x122c   :  { %v1931_v48 = vpop.f32.mrb[29].mxu1 }
0x122d   :  { %v2573_v49 = vpop.f32.mrb[36].mxu0  ;;  %v1303_v35 = vpop.f32.mrb[30].mxu1  ;;  %v1070_v12 = vld [vmem:[#allocation2 + $0x60] sm:$0xff] }
0x122e   :  { %v1915_v50 = vpop.f32.mrb[37].mxu0  ;;  %v1932_v51 = vpop.f32.mrb[31].mxu1  ;;  %v1116_v14 = vadd.f32 %v1110_v20, %v1070_v12  ;;  %v2611_v44 = vadd.f32 %v2588_v37, %v1303_v35  ;;  %v2619_v35 = vadd.f32 %v2588_v37, %v2568_v42 }
0x122f   :  { %v1271_v52 = vpop.f32.mrb[38].mxu0  ;;  %v1071_v13 = vld [vmem:[#allocation2 + $0x68] sm:$0xff] }
0x1230   :  { %v1916_v53 = vpop.f32.mrb[39].mxu0  ;;  %v1117_v15 = vadd.f32 %v1113_v33, %v1071_v13  ;;  %v1737_v16 = vmul.f32 -1.442695, %v1116_v14  ;;  %v2595_v39 = vadd.f32 %v2588_v37, %v1271_v52 }
0x1232   :  { %v1738_v18 = vmul.f32 -1.442695, %v1117_v15  ;;  %2040 = vpow2.f32 %v1737_v16 }
0x1234   :  { %2042 = vpow2.f32 %v1738_v18 }
0x1235   :  { %v2575_v54 = vpop.f32.mrb[40].mxu0 }
0x1236   :  { %v1919_v55 = vpop.f32.mrb[41].mxu0 }
0x1237   :  { %v1279_v56 = vpop.f32.mrb[42].mxu0 }
0x1238   :  { %v1920_v58 = vpop.f32.mrb[43].mxu0  ;;  %v2599_v40 = vadd.f32 %v2588_v37, %v1279_v56 }
0x123c   :  { %v2041_v17 = vpop.eup %2040 }
0x123d   :  { %v2577_v59 = vpop.f32.mrb[44].mxu0  ;;  %v1124_v29 = vadd.f32 1.0, %v2041_v17 }
0x123e   :  { %v1923_v60 = vpop.f32.mrb[45].mxu0  ;;  %v2043_v19 = vpop.eup %2042 }
0x123f   :  { %v1287_v63 = vpop.f32.mrb[46].mxu0  ;;  %v1125_v30 = vadd.f32 1.0, %v2043_v19  ;;  %2044 = vrcp.f32 %v1124_v29 }
0x1240   :  { %v1924_v1 = vpop.f32.mrb[47].mxu0  ;;  %v2603_v43 = vadd.f32 %v2588_v37, %v1287_v63  ;;  %v2624_v63 = vadd.f32 %v2588_v37, %v2573_v49  ;;  %v2644_v49 = vadd.f32 %v2588_v37, %v2571_v47 }
0x1241   :  { %2046 = vrcp.f32 %v1125_v30 }
0x1245   :  { %v2579_v3 = vpop.f32.mrb[48].mxu0 }
0x1246   :  { %v1927_v5 = vpop.f32.mrb[49].mxu0  ;;  %v2639_v42 = vadd.f32 %v2588_v37, %v2579_v3 }
0x1247   :  { %v1295_v7 = vpop.f32.mrb[50].mxu0 }
0x1248   :  { %v1928_v9 = vpop.f32.mrb[51].mxu0  ;;  %v2607_v41 = vadd.f32 %v2588_v37, %v1295_v7 }
0x1249   :  { %v2045_v26 = vpop.eup %2044 }
0x124a   :  { %v1152_v45 = vsub.f32 1.0, %v2045_v26  ;;  %v1164_v52 = vmul.f32 %v2045_v26, %v2527_v23  ;;  %v2629_v23 = vadd.f32 %v2588_v37, %v2575_v54 }
0x124b   :  { %v2047_v25 = vpop.eup %2046 }
0x124c   :  { %v1153_v50 = vsub.f32 1.0, %v2047_v25  ;;  %v1165_v53 = vmul.f32 %v2047_v25, %v2529_v8  ;;  %v2634_v8 = vadd.f32 %v2588_v37, %v2577_v59 }
0x1292   :  { %v1133_v22 = vpop.permute.xlu0 %1132 }
0x1293   :  { %v1138_v24 = vmul.f32 %v2045_v26, %v1133_v22 }
0x1294   :  { %v1135_v27 = vpop.permute.xlu1 %1134 }
0x1295   :  { %v1139_v28 = vmul.f32 %v2047_v25, %v1135_v27  ;;  %1142 = vrot.lane.b32.xlu0 %v1138_v24, %s2137_s2 }
0x1297   :  { %1144 = vrot.lane.b32.xlu1 %v1139_v28, %s2137_s2 }
0x1307   :  { %v1143_v20 = vpop.permute.xlu0 %1142 }
0x1308   :  { %v1148_v31 = vadd.f32 %v1143_v20, %v1070_v12 }
0x1309   :  { %v1145_v32 = vpop.permute.xlu1 %1144 }
0x130a   :  { %2048 = vtanh.f32 %v1148_v31  ;;  %v1149_v33 = vadd.f32 %v1145_v32, %v1071_v13 }
0x130c   :  { %2050 = vtanh.f32 %v1149_v33 }
0x1314   :  { %v2049_v34 = vpop.eup %2048 }
0x1315   :  { %1156 = vrot.lane.b32.xlu0 %v2049_v34, %s2138_s8 }
0x1316   :  { %v2051_v36 = vpop.eup %2050 }
0x1317   :  { %1158 = vrot.lane.b32.xlu1 %v2051_v36, %s2138_s8 }
0x133b   :  { %1479 = vmax.xlane.f32.xlu1 %v2591_v38 }
0x133f   :  { %1485 = vmax.xlane.f32.xlu1 %v2595_v39 }
0x1343   :  { %1489 = vmax.xlane.f32.xlu1 %v2599_v40 }
0x1347   :  { %1493 = vmax.xlane.f32.xlu1 %v2603_v43 }
0x134b   :  { %1497 = vmax.xlane.f32.xlu1 %v2607_v41 }
0x134f   :  { %1501 = vmax.xlane.f32.xlu1 %v2611_v44 }
0x1387   :  { %v1157_v46 = vpop.permute.xlu0 %1156 }
0x1388   :  { %v1162_v48 = vmul.f32 %v1157_v46, %v1152_v45 }
0x1389   :  { %v1159_v51 = vpop.permute.xlu1 %1158 }
0x138a   :  { %v1163_v55 = vmul.f32 %v1159_v51, %v1153_v50  ;;  %v1166_v56 = vadd.f32 %v1164_v52, %v1162_v48 }
0x138c   :  { %v1167_v58 = vadd.f32 %v1165_v53, %v1163_v55 }
0x138e   :  { %v1168_v60 = vpack.c.bf16 %v1167_v58, %v1166_v56 }
0x1390   :  { %1170 = vrot.lane.b32.xlu0 %v1168_v60, %s2138_s8 }
0x13af   :  { %1481 = vmax.xlane.f32.xlu0 %v2619_v35 }
0x13b3   :  { %1483 = vmax.xlane.f32.xlu0 %v2624_v63 }
0x13b7   :  { %1487 = vmax.xlane.f32.xlu0 %v2629_v23 }
0x13bb   :  { %1491 = vmax.xlane.f32.xlu0 %v2634_v8 }
0x13bf   :  { %1495 = vmax.xlane.f32.xlu0 %v2639_v42 }
0x13c3   :  { %1499 = vmax.xlane.f32.xlu0 %v2644_v49 }
0x13c8   :  { %v2647_v54 = vpop.xlane.xlu1 %1479 }
0x13c9   :  { %v1507_v59 = vsub.f32 %v2591_v38, %v2647_v54 }
0x13cb   :  { %v1521_v1 = vmul.f32 1.442695, %v1507_v59 }
0x13cc   :  { %v2653_v9 = vpop.xlane.xlu1 %1485 }
0x13cd   :  { %2052 = vpow2.f32 %v1521_v1  ;;  %v1510_v12 = vsub.f32 %v2595_v39, %v2653_v9 }
0x13cf   :  { %v1527_v16 = vmul.f32 1.442695, %v1510_v12 }
0x13d0   :  { %v2655_v47 = vpop.xlane.xlu1 %1489 }
0x13d1   :  { %v1512_v19 = vsub.f32 %v2599_v40, %v2655_v47 }
0x13d3   :  { %v1531_v26 = vmul.f32 1.442695, %v1512_v19 }
0x13d4   :  { %v2663_v18 = vpop.xlane.xlu1 %1493 }
0x13d5   :  { %v1514_v22 = vsub.f32 %v2603_v43, %v2663_v18 }
0x13d7   :  { %v2053_v5 = vpop.eup %2052  ;;  %v1535_v25 = vmul.f32 1.442695, %v1514_v22 }
0x13d8   :  { %1549 = vadd.xlane.f32.xlu0 %v2053_v5  ;;  %v2673_v24 = vpop.xlane.xlu1 %1497 }
0x13d9   :  { %v1516_v27 = vsub.f32 %v2607_v41, %v2673_v24 }
0x13db   :  { %v1539_v20 = vmul.f32 1.442695, %v1516_v27 }
0x13dc   :  { %v2681_v48 = vpop.xlane.xlu1 %1501 }
0x13dd   :  { %v1518_v51 = vsub.f32 %v2611_v44, %v2681_v48 }
0x13df   :  { %v1543_v56 = vmul.f32 1.442695, %v1518_v51 }
0x1402   :  { %v1171_v7 = vpop.permute.xlu0 %1170 }
0x1403   :  { %1174 = vst.msk [vmem:[#allocation3 + $0x30] sm:$0xff] %vm66_vm1, %v1171_v7 }
0x140a   :  { %v1181_v3 = vld [vmem:[#allocation3 + $0x30] sm:$0xff] }
0x140b   :  { %1934 = vmatmul.mubr.msk.bf16.gmra.mrb[32].mxu1 %vm66_vm1, %v1181_v3 }
0x143c   :  { %v2659_v13 = vpop.xlane.xlu0 %1481 }
0x143d   :  { %v1508_v14 = vsub.f32 %v2619_v35, %v2659_v13 }
0x143f   :  { %v1523_v15 = vmul.f32 1.442695, %v1508_v14 }
0x1440   :  { %v2665_v17 = vpop.xlane.xlu0 %1483 }
0x1441   :  { %2054 = vpow2.f32 %v1523_v15  ;;  %v1509_v29 = vsub.f32 %v2624_v63, %v2665_v17 }
0x1442   :  { %2056 = vpow2.f32 %v1527_v16 }
0x1443   :  { %v1525_v30 = vmul.f32 1.442695, %v1509_v29 }
0x1444   :  { %v2677_v45 = vpop.xlane.xlu0 %1487 }
0x1445   :  { %2058 = vpow2.f32 %v1525_v30  ;;  %v1511_v50 = vsub.f32 %v2629_v23, %v2677_v45 }
0x1446   :  { %2060 = vpow2.f32 %v1531_v26 }
0x1447   :  { %2062 = vpow2.f32 %v1535_v25  ;;  %v1529_v53 = vmul.f32 1.442695, %v1511_v50 }
0x1448   :  { %2064 = vpow2.f32 %v1539_v20  ;;  %v2679_v46 = vpop.xlane.xlu0 %1491 }
0x1449   :  { %v1513_v55 = vsub.f32 %v2634_v8, %v2679_v46  ;;  %2066 = vpow2.f32 %v1529_v53 }
0x144a   :  { %2068 = vpow2.f32 %v1543_v56 }
0x144b   :  { %v2055_v28 = vpop.eup %2054  ;;  %v1533_v58 = vmul.f32 1.442695, %v1513_v55 }
0x144c   :  { %1551 = vadd.xlane.f32.xlu1 %v2055_v28  ;;  %v2057_v31 = vpop.eup %2056  ;;  %v2687_v52 = vpop.xlane.xlu0 %1495 }
0x144d   :  { %v1515_v60 = vsub.f32 %v2639_v42, %v2687_v52  ;;  %2070 = vpow2.f32 %v1533_v58 }
0x144f   :  { %v2059_v32 = vpop.eup %2058  ;;  %v1537_v1 = vmul.f32 1.442695, %v1515_v60 }
0x1450   :  { %1553 = vadd.xlane.f32.xlu0 %v2059_v32  ;;  %1555 = vadd.xlane.f32.xlu1 %v2057_v31  ;;  %v2061_v33 = vpop.eup %2060  ;;  %v2693_v59 = vpop.xlane.xlu0 %1499 }
0x1451   :  { %v2063_v34 = vpop.eup %2062  ;;  %v1517_v5 = vsub.f32 %v2644_v49, %v2693_v59  ;;  %2072 = vpow2.f32 %v1537_v1 }
0x1452   :  { %v2065_v36 = vpop.eup %2064 }
0x1453   :  { %v1541_v19 = vmul.f32 1.442695, %v1517_v5  ;;  %v2067_v29 = vpop.eup %2066 }
0x1454   :  { %1559 = vadd.xlane.f32.xlu1 %v2061_v33  ;;  %v2069_v30 = vpop.eup %2068 }
0x1455   :  { %2074 = vpow2.f32 %v1541_v19 }
0x1457   :  { %v2071_v26 = vpop.eup %2070 }
0x1458   :  { %1563 = vadd.xlane.f32.xlu1 %v2063_v34 }
0x145b   :  { %v2073_v22 = vpop.eup %2072 }
0x145c   :  { %1567 = vadd.xlane.f32.xlu1 %v2065_v36 }
0x145f   :  { %v2075_v25 = vpop.eup %2074 }
0x1465   :  { %v1550_v33 = vpop.xlane.xlu0 %1549 }
0x1466   :  { %2076 = vlog2.f32 %v1550_v33 }
0x1470   :  { %v2077_v5 = vpop.eup %2076 }
0x14dd   :  { %v1554_v36 = vpop.xlane.xlu0 %1553 }
0x14de   :  { %v1308_v7 = vpop.f32.mrb[32].mxu1 }
0x14df   :  { %v2698_v3 = vadd.f32 %v2588_v37, %v1308_v7  ;;  %v1935_v12 = vpop.f32.mrb[33].mxu1 }
0x14e0   :  { %v1311_v14 = vpop.f32.mrb[34].mxu1 }
0x14e1   :  { %v2701_v15 = vadd.f32 %v2588_v37, %v1311_v14  ;;  %v1936_v16 = vpop.f32.mrb[35].mxu1  ;;  %1503 = vmax.xlane.f32.xlu0 %v2698_v3  ;;  %v2708_v37 = vld [vmem:[%s2824_s1] sm:$0x7f]  ;;  %s2140_s1 = smov [#allocation4]  }
0x14e2   :  { %v1319_v27 = vrot.slane %v2708_v37, %v118_v10  ;;  %v1330_v28 = vrot.slane %v2708_v37, %v129_v11  ;;  %v1341_v20 = vrot.slane %v2708_v37, %v140_v4  ;;  %v1352_v31 = vrot.slane %v2708_v37, %v151_v0  ;;  %v1552_v4 = vpop.xlane.xlu1 %1551  ;;  %s1680_s18 = sshll.u32 %s2140_s1, 4  ;;  %s1681_s18 = int_to_ptr.vmem [resolvable:$true] %s1680_s18 }
0x14e3   :  { %1505 = vmax.xlane.f32.xlu1 %v2701_v15  ;;  %v1363_v10 = vrot.slane %v2708_v37, %v162_v62  ;;  %v1374_v11 = vrot.slane %v2708_v37, %v173_v61  ;;  %2078 = vlog2.f32 %v1552_v4  ;;  %s2110_s20 = scalar_lea.vmem %s1681_s18, 128  ;;  %p2115_p1 = scmp.lt.s32.totalorder %s1681_s18, %s1681_s18 }
0x14e4   :  { %2080 = vlog2.f32 %v1554_v36  ;;  %p2111_p0 = scmp.ne.s32.totalorder %s1681_s18, %s2110_s20  ;;  %p2116_p2 = scmp.lt.s32.totalorder %s2110_s20, %s2110_s20 }
0x14e5   :  { %1557 = vadd.xlane.f32.xlu0 %v2067_v29  ;;  %v1578_v29 = vmul.f32 0.6931472, %v2077_v5 }
0x14e6   :  { %v1556_v32 = vpop.xlane.xlu1 %1555  ;;  %p2117_p3 = por %p2116_p2, %p2115_p1 }
0x14e7   :  { %1571 = vadd.xlane.f32.xlu1 %v2069_v30  ;;  %2082 = vlog2.f32 %v1556_v32 }
0x14e8   :  { %p2118_p4 = pnand %p2117_p3, %p2111_p0 }
0x14e9   :  { %1561 = vadd.xlane.f32.xlu0 %v2071_v26 }
0x14ea   :  { %v1560_v0 = vpop.xlane.xlu1 %1559 }
0x14eb   :  { %2084 = vlog2.f32 %v1560_v0 }
0x14ed   :  { %1565 = vadd.xlane.f32.xlu0 %v2073_v22  ;;  %v2079_v12 = vpop.eup %2078 }
0x14ee   :  { %v1564_v34 = vpop.xlane.xlu1 %1563  ;;  %v2081_v14 = vpop.eup %2080 }
0x14f1   :  { %1569 = vadd.xlane.f32.xlu0 %v2075_v25  ;;  %v2083_v19 = vpop.eup %2082  ;;  %v1580_v25 = vmul.f32 0.6931472, %v2079_v12 }
0x14f2   :  { %v2728_v50 = vpop.xlane.xlu1 %1567 }
0x14f3   :  { %v1606_v32 = vadd.f32 %v1580_v25, %v2659_v13 }
0x14f5   :  { %v2085_v30 = vpop.eup %2084 }
0x14f8   :  { %1325 = vbcast.lane.b32.xlu1 %v1319_v27, 264 }
0x14fc   :  { %1332 = vbcast.lane.b32.xlu1 %v1330_v28, 256 }
0x1500   :  { %1343 = vbcast.lane.b32.xlu1 %v1341_v20, 256 }
0x1504   :  { %1354 = vbcast.lane.b32.xlu1 %v1352_v31, 256 }
0x1507   :  { %1321 = vbcast.lane.b32.xlu0 %v1319_v27, 256 }
0x1508   :  { %1365 = vbcast.lane.b32.xlu1 %v1363_v10, 256 }
0x150b   :  { %1336 = vbcast.lane.b32.xlu0 %v1330_v28, 264  ;;  %v1582_v28 = vmul.f32 0.6931472, %v2081_v14 }
0x150c   :  { %1376 = vbcast.lane.b32.xlu1 %v1374_v11, 256 }
0x150f   :  { %1347 = vbcast.lane.b32.xlu0 %v1341_v20, 264  ;;  %v1584_v20 = vmul.f32 0.6931472, %v2083_v19 }
0x1511   :  { %v1608_v36 = vadd.f32 %v1584_v20, %v2653_v9 }
0x1513   :  { %1358 = vbcast.lane.b32.xlu0 %v1352_v31, 264  ;;  %v1622_v14 = vsub.f32 %v1608_v36, %v2595_v39 }
0x1517   :  { %1369 = vbcast.lane.b32.xlu0 %v1363_v10, 264 }
0x151b   :  { %1380 = vbcast.lane.b32.xlu0 %v1374_v11, 264  ;;  %v1605_v11 = vadd.f32 %v1578_v29, %v2647_v54 }
0x156e   :  { %v2730_v62 = vpop.xlane.xlu0 %1503 }
0x156f   :  { %v1519_v61 = vsub.f32 %v2698_v3, %v2730_v62 }
0x1570   :  { %v2734_v51 = vpop.xlane.xlu1 %1505 }
0x1571   :  { %v1545_v53 = vmul.f32 1.442695, %v1519_v61  ;;  %v1520_v55 = vsub.f32 %v2701_v15, %v2734_v51  ;;  %v1588_v61 = vmul.f32 0.6931472, %v2085_v30 }
0x1572   :  { %v1558_v56 = vpop.xlane.xlu0 %1557 }
0x1573   :  { %2086 = vpow2.f32 %v1545_v53  ;;  %v1547_v58 = vmul.f32 1.442695, %v1520_v55  ;;  %v1619_v55 = vsub.f32 %v1605_v11, %v2591_v38  ;;  %v1610_v38 = vadd.f32 %v1588_v61, %v2655_v47 }
0x1574   :  { %2088 = vlog2.f32 %v1558_v56  ;;  %v2738_v60 = vpop.xlane.xlu1 %1571 }
0x1575   :  { %2090 = vpow2.f32 %v1547_v58  ;;  %v1624_v20 = vsub.f32 %v1610_v38, %v2599_v40 }
0x1576   :  { %v1562_v1 = vpop.xlane.xlu0 %1561 }
0x1577   :  { %2092 = vlog2.f32 %v1562_v1 }
0x1578   :  { %v1326_v7 = vpop.permute.xlu1 %1325  ;;  %2094 = vlog2.f32 %v1564_v34  ;;  %v1607_v34 = vadd.f32 %v1582_v28, %v2665_v17  ;;  %v1620_v17 = vsub.f32 %v1606_v32, %v2619_v35 }
0x1579   :  { %vm1394_vm0 = vcmp.eq.s32.totalorder %v1326_v7, %v2281_v21  ;;  %vm1408_vm1 = vcmp.ne.s32.totalorder %v1326_v7, 0 }
0x157a   :  { %v2740_v16 = vpop.xlane.xlu0 %1565  ;;  %vm1450_vm12 = vmand %vm1394_vm0, %vm1408_vm1  ;;  %v1621_v5 = vsub.f32 %v1607_v34, %v2624_v63 }
0x157b   :  { %v1464_v54 = vsel %vm1450_vm12, 1.0, %v2134_v2  ;;  %2096 = vlog2.f32 %v2740_v16 }
0x157c   :  { %v1333_v26 = vpop.permute.xlu1 %1332  ;;  %v1634_v19 = vmul.f32 %v1620_v17, %v1464_v54  ;;  %2098 = vlog2.f32 %v2728_v50 }
0x157d   :  { %v2087_v22 = vpop.eup %2086  ;;  %vm1395_vm5 = vcmp.eq.s32.totalorder %v1333_v26, %v2281_v21  ;;  %vm1409_vm11 = vcmp.ne.s32.totalorder %v1333_v26, 0 }
0x157e   :  { %v2089_v27 = vpop.eup %2088  ;;  %1573 = vadd.xlane.f32.xlu0 %v2087_v22  ;;  %v2743_v31 = vpop.xlane.xlu0 %1569  ;;  %vm1451_vm13 = vmand %vm1395_vm5, %vm1409_vm11 }
0x157f   :  { %v2091_v10 = vpop.eup %2090  ;;  %v1586_v0 = vmul.f32 0.6931472, %v2089_v27  ;;  %v1465_v9 = vsel %vm1451_vm13, 1.0, %v2134_v2  ;;  %2100 = vlog2.f32 %v2743_v31 }
0x1580   :  { %1575 = vadd.xlane.f32.xlu1 %v2091_v10  ;;  %v1344_v4 = vpop.permute.xlu1 %1343  ;;  %v1635_v29 = vmul.f32 %v1621_v5, %v1465_v9  ;;  %2102 = vlog2.f32 %v2738_v60 }
0x1581   :  { %v2093_v33 = vpop.eup %2092  ;;  %vm1397_vm15 = vcmp.eq.s32.totalorder %v1344_v4, %v2281_v21  ;;  %vm1411_vm2 = vcmp.ne.s32.totalorder %v1344_v4, 0  ;;  %v1609_v56 = vadd.f32 %v1586_v0, %v2677_v45 }
0x1582   :  { %v1322_v53 = vpop.permute.xlu0 %1321  ;;  %v2095_v13 = vpop.eup %2094  ;;  %v1590_v58 = vmul.f32 0.6931472, %v2093_v33  ;;  %vm1453_vm6 = vmand %vm1397_vm15, %vm1411_vm2 }
0x1583   :  { %vm1393_vm14 = vcmp.eq.s32.totalorder %v1322_v53, %v2281_v21  ;;  %vm1407_vm3 = vcmp.ne.s32.totalorder %v1322_v53, 0  ;;  %v1592_v35 = vmul.f32 0.6931472, %v2095_v13  ;;  %v1623_v47 = vsub.f32 %v1609_v56, %v2629_v23 }
0x1584   :  { %vm1449_vm4 = vmand %vm1393_vm14, %vm1407_vm3  ;;  %v1355_v1 = vpop.permute.xlu1 %1354  ;;  %v1611_v63 = vadd.f32 %v1590_v58, %v2679_v46  ;;  %v1467_v26 = vsel %vm1453_vm6, 1.0, %v2134_v2  ;;  %v1385_v23 = vrot.slane %v2708_v37, %v184_v57 }
0x1585   :  { %v1463_v7 = vsel %vm1449_vm4, 1.0, %v2134_v2  ;;  %vm1399_vm9 = vcmp.eq.s32.totalorder %v1355_v1, %v2281_v21  ;;  %vm1413_vm10 = vcmp.ne.s32.totalorder %v1355_v1, 0  ;;  %v1612_v28 = vadd.f32 %v1592_v35, %v2663_v18  ;;  %v2097_v53 = vpop.eup %2096 }
0x1586   :  { %v1337_v12 = vpop.permute.xlu0 %1336  ;;  %v1633_v45 = vmul.f32 %v1619_v55, %v1463_v7  ;;  %vm1455_vm1 = vmand %vm1399_vm9, %vm1413_vm10  ;;  %v1637_v46 = vmul.f32 %v1623_v47, %v1467_v26  ;;  %v1625_v10 = vsub.f32 %v1611_v63, %v2634_v8  ;;  %v2099_v13 = vpop.eup %2098 }
0x1587   :  { %vm1396_vm7 = vcmp.eq.s32.totalorder %v1337_v12, %v2281_v21  ;;  %vm1410_vm8 = vcmp.ne.s32.totalorder %v1337_v12, 0  ;;  %v1469_v32 = vsel %vm1455_vm1, 1.0, %v2134_v2  ;;  %v1626_v40 = vsub.f32 %v1612_v28, %v2603_v43 }
0x1588   :  { %vm1452_vm0 = vmand %vm1396_vm7, %vm1410_vm8  ;;  %v1647_v39 = vadd.f32 %v1634_v19, %v1633_v45  ;;  %v1639_v18 = vmul.f32 %v1625_v10, %v1469_v32  ;;  %v1594_v43 = vmul.f32 0.6931472, %v2097_v53  ;;  %v1366_v54 = vpop.permute.xlu1 %1365  ;;  %v1596_v56 = vmul.f32 0.6931472, %v2099_v13 }
0x1589   :  { %v1466_v30 = vsel %vm1452_vm0, 1.0, %v2134_v2  ;;  %vm1401_vm2 = vcmp.eq.s32.totalorder %v1366_v54, %v2281_v21  ;;  %vm1415_vm3 = vcmp.ne.s32.totalorder %v1366_v54, 0  ;;  %v2101_v9 = vpop.eup %2100 }
0x158a   :  { %v1636_v22 = vmul.f32 %v1622_v14, %v1466_v30  ;;  %v1348_v25 = vpop.permute.xlu0 %1347  ;;  %v1648_v27 = vadd.f32 %v1647_v39, %v1635_v29  ;;  %v1613_v58 = vadd.f32 %v1594_v43, %v2687_v52  ;;  %vm1457_vm7 = vmand %vm1401_vm2, %vm1415_vm3  ;;  %v1614_v16 = vadd.f32 %v1596_v56, %v2673_v24  ;;  %v2103_v38 = vpop.eup %2102 }
0x158b   :  { %vm1398_vm5 = vcmp.eq.s32.totalorder %v1348_v25, %v2281_v21  ;;  %vm1412_vm11 = vcmp.ne.s32.totalorder %v1348_v25, 0  ;;  %v1598_v31 = vmul.f32 0.6931472, %v2101_v9  ;;  %v1471_v5 = vsel %vm1457_vm7, 1.0, %v2134_v2 }
0x158c   :  { %vm1454_vm12 = vmand %vm1398_vm5, %vm1412_vm11  ;;  %v1649_v11 = vadd.f32 %v1648_v27, %v1636_v22  ;;  %v1377_v50 = vpop.permute.xlu1 %1376  ;;  %v1627_v60 = vsub.f32 %v1613_v58, %v2639_v42  ;;  %v1600_v12 = vmul.f32 0.6931472, %v2103_v38  ;;  %v1628_v19 = vsub.f32 %v1614_v16, %v2607_v41 }
0x158d   :  { %v1468_v4 = vsel %vm1454_vm12, 1.0, %v2134_v2  ;;  %vm1403_vm9 = vcmp.eq.s32.totalorder %v1377_v50, %v2281_v21  ;;  %vm1417_vm10 = vcmp.ne.s32.totalorder %v1377_v50, 0  ;;  %v1615_v14 = vadd.f32 %v1598_v31, %v2693_v59 }
0x158e   :  { %v1638_v0 = vmul.f32 %v1624_v20, %v1468_v4  ;;  %v1359_v33 = vpop.permute.xlu0 %1358  ;;  %v1650_v34 = vadd.f32 %v1649_v11, %v1637_v46  ;;  %v1641_v24 = vmul.f32 %v1627_v60, %v1471_v5  ;;  %vm1459_vm5 = vmand %vm1403_vm9, %vm1417_vm10  ;;  %v1616_v29 = vadd.f32 %v1600_v12, %v2681_v48 }
0x158f   :  { %vm1400_vm13 = vcmp.eq.s32.totalorder %v1359_v33, %v2281_v21  ;;  %vm1414_vm14 = vcmp.ne.s32.totalorder %v1359_v33, 0  ;;  %v1629_v63 = vsub.f32 %v1615_v14, %v2644_v49  ;;  %v1473_v39 = vsel %vm1459_vm5, 1.0, %v2134_v2 }
0x1590   :  { %vm1456_vm15 = vmand %vm1400_vm13, %vm1414_vm14  ;;  %v1651_v36 = vadd.f32 %v1650_v34, %v1638_v0  ;;  %v1630_v22 = vsub.f32 %v1616_v29, %v2611_v44 }
0x1591   :  { %v1470_v57 = vsel %vm1456_vm15, 1.0, %v2134_v2  ;;  %1387 = vbcast.lane.b32.xlu1 %v1385_v23, 256  ;;  %v1643_v26 = vmul.f32 %v1629_v63, %v1473_v39 }
0x1592   :  { %v1640_v8 = vmul.f32 %v1626_v40, %v1470_v57  ;;  %v1652_v37 = vadd.f32 %v1651_v36, %v1639_v18  ;;  %v1370_v55 = vpop.permute.xlu0 %1369 }
0x1593   :  { %vm1402_vm4 = vcmp.eq.s32.totalorder %v1370_v55, %v2281_v21  ;;  %vm1416_vm6 = vcmp.ne.s32.totalorder %v1370_v55, 0 }
0x1594   :  { %1391 = vbcast.lane.b32.xlu0 %v1385_v23, 264  ;;  %v1653_v61 = vadd.f32 %v1652_v37, %v1640_v8  ;;  %vm1458_vm8 = vmand %vm1402_vm4, %vm1416_vm6  ;;  %vm1669_vm4 = vcmp.eq.s32.totalorder %v2218_v6, 0 }
0x1595   :  { %v1472_v52 = vsel %vm1458_vm8, 1.0, %v2134_v2 }
0x1596   :  { %v1381_v17 = vpop.permute.xlu0 %1380  ;;  %v1642_v42 = vmul.f32 %v1628_v19, %v1472_v52  ;;  %v1654_v45 = vadd.f32 %v1653_v61, %v1641_v24 }
0x1597   :  { %vm1404_vm0 = vcmp.eq.s32.totalorder %v1381_v17, %v2281_v21  ;;  %vm1418_vm1 = vcmp.ne.s32.totalorder %v1381_v17, 0 }
0x1598   :  { %vm1460_vm11 = vmand %vm1404_vm0, %vm1418_vm1  ;;  %v1655_v59 = vadd.f32 %v1654_v45, %v1642_v42 }
0x1599   :  { %v1474_v30 = vsel %vm1460_vm11, 1.0, %v2134_v2 }
0x159a   :  { %v1644_v25 = vmul.f32 %v1630_v22, %v1474_v30  ;;  %v1656_v27 = vadd.f32 %v1655_v59, %v1643_v26 }
0x159c   :  { %v1657_v11 = vadd.f32 %v1656_v27, %v1644_v25 }
0x160b   :  { %v1574_v1 = vpop.xlane.xlu0 %1573 }
0x160c   :  { %2104 = vlog2.f32 %v1574_v1 }
0x160d   :  { %v1576_v7 = vpop.xlane.xlu1 %1575 }
0x160e   :  { %2106 = vlog2.f32 %v1576_v7 }
0x160f   :  { %v1392_v47 = vpop.permute.xlu0 %1391 }
0x1610   :  { %vm1406_vm14 = vcmp.eq.s32.totalorder %v1392_v47, %v2281_v21  ;;  %vm1420_vm15 = vcmp.ne.s32.totalorder %v1392_v47, 0 }
0x1611   :  { %v1388_v35 = vpop.permute.xlu1 %1387  ;;  %vm1462_vm3 = vmand %vm1406_vm14, %vm1420_vm15 }
0x1612   :  { %vm1405_vm12 = vcmp.eq.s32.totalorder %v1388_v35, %v2281_v21  ;;  %vm1419_vm13 = vcmp.ne.s32.totalorder %v1388_v35, 0  ;;  %v1476_v21 = vsel %vm1462_vm3, 1.0, %v2134_v2 }
0x1613   :  { %vm1461_vm2 = vmand %vm1405_vm12, %vm1419_vm13 }
0x1614   :  { %v1475_v23 = vsel %vm1461_vm2, 1.0, %v2134_v2 }
0x1616   :  { %v2105_v41 = vpop.eup %2104 }
0x1617   :  { %v1602_v48 = vmul.f32 0.6931472, %v2105_v41 }
0x1618   :  { %v2107_v49 = vpop.eup %2106 }
0x1619   :  { %v1617_v28 = vadd.f32 %v1602_v48, %v2730_v62  ;;  %v1604_v20 = vmul.f32 0.6931472, %v2107_v49 }
0x161b   :  { %v1618_v46 = vadd.f32 %v1604_v20, %v2734_v51  ;;  %v1631_v10 = vsub.f32 %v1617_v28, %v2698_v3 }
0x161d   :  { %v1645_v4 = vmul.f32 %v1631_v10, %v1475_v23  ;;  %v1632_v44 = vsub.f32 %v1618_v46, %v2701_v15 }
0x161f   :  { %v1646_v32 = vmul.f32 %v1632_v44, %v1476_v21  ;;  %v1658_v0 = vadd.f32 %v1657_v11, %v1645_v4 }
0x1621   :  { %v1659_v33 = vadd.f32 %v1658_v0, %v1646_v32 }
0x1623   :  { %1660 = vadd.xlane.f32.xlu1 %v1659_v33 }
0x16b0   :  { %v1661_v34 = vpop.xlane.xlu1 %1660 }
0x16b1   :  { %v1662_v62 = vrot.slane %v1661_v34, 4 }
0x16b3   :  { %v1663_v40 = vadd.f32 %v1662_v62, %v1661_v34 }
0x16b5   :  { %v1664_v18 = vrot.slane %v1663_v40, 2 }
0x16b7   :  { %v1665_v36 = vadd.f32 %v1664_v18, %v1663_v40 }
0x16b9   :  { %v1666_v57 = vrot.slane %v1665_v36, 1 }
0x16bb   :  { %v1667_v8 = vadd.f32 %v1666_v57, %v1665_v36 }
0x16bd   :  { %1941 = vpush %v1667_v8 }
0x16ee   :  { %s1942_s19 = spop %1941 }
0x16ef   :  { %v1670_v2 = vstv %s1942_s19 }
0x16f0   :  { %v1671_v3 = vsel %vm1669_vm4, %v1670_v2, 0.0 }
0x16f1   :  { %1673 = vst [vmem:[#allocation4] sm:$0xff] %v1671_v3 }
0x16f2   :  { %2121 = shalt.err (!%p2118_p4)
}
0x16f3   :  { %s2122_s23 = scalar_lea.hbm %s2834_s11, 128 }
0x16f4   :  { %p2123_p5 = scmp.ne.s32.totalorder %s2834_s11, %s2122_s23  ;;  %p2126_p6 = scmp.lt.u32.totalorder %s2122_s23, %s2834_s11 }
0x16f6   :  { %p2128_p7 = pnand %p2126_p6, %p2123_p5 }
0x16f8   :  { %2131 = shalt.err (!%p2128_p7)
}
0x16f9   :  { %1683 = dma.vmem_to_hbm [thread:$0]  %s1681_s18, 128, %s2834_s11, [#allocation5]  }
0x16fa   :  { %2132 = dma.done.wait [#allocation5], 128  }
0x16fb   :  { %2133 = vsyncadd [#allocation5], 4294967168 }
0x16fc   :  { %1687 = vsyncpa [#allocation5], 1 }

</bundles_post_ra>
